<compile_context>
chip_gen: v5e
topology: v5e:2x2
jax: 0.10.0
libtpu: 0.0.40
codegen_flags: <defaults>
</compile_context>

<pallas_src>
import jax
import jax.numpy as jnp
from jax.experimental import pallas as pl
from jax.experimental.pallas import tpu as pltpu


def _round_up(n, m):
    return ((n + m - 1) // m) * m


def _vmem_limit_bytes():
    """Per-generation VMEM budget (v5e/v6e: ~100 MiB, v7x: ~48 MiB)."""
    cap = 64 * 1024 * 1024  # conservative fallback (v7x-sized)
    try:
        cap = int(pltpu.get_tpu_info().vmem_capacity_bytes)
    except Exception:
        pass
    # Leave headroom for compiler scratch; never ask for more than 100 MiB.
    return int(min(max(cap - 16 * 1024 * 1024, 32 * 1024 * 1024),
                   100 * 1024 * 1024))


def _pick_tv(V):
    """Lane-dense vocab tile minimizing padding waste of round_up(V, tv)."""
    v128 = _round_up(V, 128)
    if v128 <= 2048:
        return v128
    best_key, best_tv = None, 512
    for cand in (2048, 1792, 1536, 1280, 1024, 768, 512):
        pad = _round_up(V, cand) - V
        key = (pad, -cand)          # least padding, then largest tile
        if best_key is None or key < best_key:
            best_key, best_tv = key, cand
    return best_tv


def _vmem_footprint(tm, tv, D, op_bytes, out_bytes, w2_buffers):
    """Approximate pipeline VMEM footprint (constants single-buffered)."""
    f = 0
    f += 2 * tm * D * op_bytes                    # x row tile, double-buffered
    f += 1 * D * D * op_bytes                     # w1 (grid-constant)
    f += 3 * D * 4                                # b1 / gamma / beta (f32)
    f += max(2, w2_buffers) * D * tv * op_bytes   # w2 vocab tiles
    f += 2 * tv * 4                               # b2 tiles
    f += 2 * tm * tv * out_bytes                  # output tiles
    f += tm * D * op_bytes                        # hn scratch
    return f


def _spec(shape, index_map, buffer_count=None):
    """BlockSpec with optional pipeline_mode=pl.Buffered(n) (safe fallback)."""
    if buffer_count is not None and hasattr(pl, "Buffered"):
        try:
            return pl.BlockSpec(shape, index_map,
                                pipeline_mode=pl.Buffered(buffer_count))
        except TypeError:
            pass
    return pl.BlockSpec(shape, index_map)


def _mlm_head_kernel(x_ref, w1_ref, b1_ref, g_ref, beta_ref, w2_ref, b2_ref,
                     o_ref, hn_ref):
    # x_ref:   (tm, D)   row tile of the flattened input (matmul dtype)
    # w1_ref:  (D, D)    transform weight (full, grid-constant)
    # b1_ref:  (1, D)    transform bias (f32)
    # g_ref:   (1, D)    layernorm gamma (f32)
    # beta_ref:(1, D)    layernorm beta (f32)
    # w2_ref:  (D, tv)   output-projection weight tile (vocab-tiled)
    # b2_ref:  (1, tv)   output-projection bias tile (f32)
    # o_ref:   (tm, tv)  output tile
    # hn_ref:  (tm, D)   VMEM scratch caching the normalized hidden state

    # Expensive transform + GeLU + LayerNorm is hoisted out of the vocab
    # loop: runs only on the first vocab tile of each row tile, reused for
    # all remaining vocab tiles (j is the inner "arbitrary" axis).
    @pl.when(pl.program_id(1) == 0)
    def _():
        # transform: Linear(dim, dim), f32 accumulation on the MXU
        h = jnp.dot(x_ref[...], w1_ref[...],
                    preferred_element_type=jnp.float32)
        h = h + b1_ref[...]
        # GeLU — BERT tanh approximation (f32 on VPU/EUP)
        c = 0.7978845608028654  # sqrt(2/pi)
        h = 0.5 * h * (1.0 + jnp.tanh(c * (h + 0.044715 * h * h * h)))
        # LayerNorm over last dim, eps=1e-10 (f32 math)
        mu = jnp.mean(h, axis=-1, keepdims=True)
        var = jnp.mean((h - mu) * (h - mu), axis=-1, keepdims=True)
        hn = (h - mu) * jax.lax.rsqrt(var + 1e-10)
        hn = hn * g_ref[...] + beta_ref[...]
        # Store once in the matmul-operand dtype (bf16 by default).
        hn_ref[...] = hn.astype(hn_ref.dtype)

    # out: Linear(dim, vocab) on the current vocab tile, f32 accumulation.
    y = jnp.dot(hn_ref[...], w2_ref[...], preferred_element_type=jnp.float32)
    y = y + b2_ref[...]
    o_ref[...] = y.astype(o_ref.dtype)


def bert_mlm_head(x, w1, b1, gamma, beta, w2, b2, *, tm=1024, tv=None,
                  matmul_dtype=jnp.bfloat16, out_dtype=None, w2_buffers=2):
    """BERT MLM head forward.

    x: [B, S, D]; w1: [D, D]; b1, gamma, beta: [D]; w2: [D, V]; b2: [V].
    tm: row tile (default 1024, clamped/aligned to M) — bigger tm raises the
        FLOPs-per-w2-byte intensity and keeps the MXU fed.
    tv: vocab tile; None -> auto-picked (lane-dense, minimal V padding).
    matmul_dtype: matmul-operand dtype (default bf16, f32 accumulation and
        f32 GeLU/LayerNorm math); None keeps the provided weight dtypes.
    out_dtype: logits dtype; None -> x.dtype.  Pass jnp.bfloat16 to halve
        the logits writeback bytes (recommended for inference).
    w2_buffers: pipeline depth for the streamed w2 tiles (3 helps if the
        inner loop is still DMA-exposed).
    """
    B, S, D = x.shape
    V = w2.shape[1]
    M = B * S
    out_dtype = x.dtype if out_dtype is None else jnp.dtype(out_dtype)

    if matmul_dtype is not None:
        w1 = w1.astype(matmul_dtype)
        w2 = w2.astype(matmul_dtype)
    op_dtype = w1.dtype
    op_bytes = jnp.dtype(op_dtype).itemsize
    out_bytes = jnp.dtype(out_dtype).itemsize

    # Sublane alignment: bf16 tiles want >=16 rows (use 32 for comfort).
    m_align = 8 if op_bytes >= 4 else 32

    # Row tile: clamp to the (aligned) problem size, keep alignment.
    tm = max(m_align, min(int(tm), _round_up(M, m_align)))
    tm = _round_up(tm, m_align)

    # Vocab tile: auto-pick to minimize padding waste; always lane-dense.
    if tv is None:
        tv = _pick_tv(V)
    tv = max(128, min(_round_up(int(tv), 128), _round_up(V, 128)))

    # Shrink tiles if the pipeline footprint would blow the VMEM budget
    # (shrink tv first — tm drives the w2-streaming arithmetic intensity).
    vmem_limit = _vmem_limit_bytes()
    budget = int(0.85 * vmem_limit)
    while _vmem_footprint(tm, tv, D, op_bytes, out_bytes, w2_buffers) > budget:
        if tv > 512:
            tv = _round_up(max(tv // 2, 512), 128)
        elif tm > 256:
            tm = _round_up(max(tm // 2, 256), m_align)
        else:
            break

    Mp = _round_up(M, tm)
    Vp = _round_up(V, tv)

    # Pre-cast x to the matmul-operand dtype in the wrapper (halves its DMA
    # bytes and removes an in-kernel cast pass).
    x2 = x.reshape(M, D).astype(op_dtype)
    if Mp != M:
        x2 = jnp.pad(x2, ((0, Mp - M), (0, 0)))
    w2p = w2 if Vp == V else jnp.pad(w2, ((0, 0), (0, Vp - V)))
    b2p = b2 if Vp == V else jnp.pad(b2, (0, Vp - V))

    b1_2 = b1.reshape(1, D).astype(jnp.float32)
    g_2 = gamma.reshape(1, D).astype(jnp.float32)
    be_2 = beta.reshape(1, D).astype(jnp.float32)
    b2_2 = b2p.reshape(1, Vp).astype(jnp.float32)

    # Advisory cost estimate: two matmuls dominate, plus w2 streaming
    # ((Mp/tm) passes over D*Vp) and the logits writeback.
    flops = 2 * Mp * D * D + 2 * Mp * D * Vp
    transcendentals = Mp * D  # tanh in GeLU
    bytes_accessed = (
        x2.size * x2.dtype.itemsize
        + w1.size * w1.dtype.itemsize
        + (Mp // tm) * D * Vp * op_bytes
        + Mp * Vp * out_bytes)
    cost = pl.CostEstimate(flops=flops, transcendentals=transcendentals,
                           bytes_accessed=bytes_accessed)

    def build(use_pipeline_mode):
        const_bufs = 1 if use_pipeline_mode else None
        w2_bufs = (w2_buffers if (use_pipeline_mode and w2_buffers != 2)
                   else None)
        return pl.pallas_call(
            _mlm_head_kernel,
            out_shape=jax.ShapeDtypeStruct((Mp, Vp), out_dtype),
            grid_spec=pltpu.PrefetchScalarGridSpec(
                num_scalar_prefetch=0,
                grid=(Mp // tm, Vp // tv),
                in_specs=[
                    pl.BlockSpec((tm, D), lambda i, j: (i, 0)),      # x tile
                    _spec((D, D), lambda i, j: (0, 0), const_bufs),  # w1
                    _spec((1, D), lambda i, j: (0, 0), const_bufs),  # b1
                    _spec((1, D), lambda i, j: (0, 0), const_bufs),  # gamma
                    _spec((1, D), lambda i, j: (0, 0), const_bufs),  # beta
                    _spec((D, tv), lambda i, j: (0, j), w2_bufs),    # w2 tile
                    pl.BlockSpec((1, tv), lambda i, j: (0, j)),      # b2 tile
                ],
                out_specs=pl.BlockSpec((tm, tv), lambda i, j: (i, j)),
                scratch_shapes=[pltpu.VMEM((tm, D), op_dtype)],
            ),
            compiler_params=pltpu.CompilerParams(
                # Row axis parallel (megacore-shardable); vocab axis is the
                # inner sequential axis so the hn scratch is reused across it.
                dimension_semantics=("parallel", "arbitrary"),
                vmem_limit_bytes=vmem_limit,
            ),
            cost_estimate=cost,
        )

    args = (x2, w1, b1_2, g_2, be_2, w2p, b2_2)
    try:
        out = build(True)(*args)
    except Exception:
        # Fallback: plain double-buffered specs if pipeline_mode / Buffered(1)
        # is not supported by this JAX/Mosaic version.
        out = build(False)(*args)

    return out[:M, :V].reshape(B, S, V)


def _reference(x, w1, b1, gamma, beta, w2, b2):
    h = jnp.einsum("bsd,de->bse", x, w1) + b1
    c = 0.7978845608028654
    h = 0.5 * h * (1.0 + jnp.tanh(c * (h + 0.044715 * h ** 3)))
    mu = jnp.mean(h, axis=-1, keepdims=True)
    var = jnp.mean((h - mu) ** 2, axis=-1, keepdims=True)
    hn = (h - mu) * jax.lax.rsqrt(var + 1e-10)
    hn = hn * gamma + beta
    return jnp.einsum("bsd,dv->bsv", hn, w2) + b2


if __name__ == "__main__":
    B, S, D, V = 2, 8, 128, 1024   # batch, seq, hidden dim, vocab size

    key = jax.random.PRNGKey(0)
    kx, k1, kb1, k2, kb2 = jax.random.split(key, 5)

    x = jax.random.normal(kx, (B, S, D), dtype=jnp.float32)

    # Deterministic synthetic parameters (shapes from the module's __init__).
    w1 = jax.random.normal(k1, (D, D), dtype=jnp.float32) * (1.0 / jnp.sqrt(D))
    b1 = jax.random.normal(kb1, (D,), dtype=jnp.float32) * 0.02
    gamma = jnp.ones((D,), dtype=jnp.float32)       # LayerNorm weight init
    beta = jnp.zeros((D,), dtype=jnp.float32)       # LayerNorm bias init
    w2 = jax.random.normal(k2, (D, V), dtype=jnp.float32) * (1.0 / jnp.sqrt(D))
    b2 = jax.random.normal(kb2, (V,), dtype=jnp.float32) * 0.02

    y_ref = _reference(x, w1, b1, gamma, beta, w2, b2)

    # 1) Production-style default: bf16 matmul operands, auto tiles.
    y = jax.block_until_ready(bert_mlm_head(x, w1, b1, gamma, beta, w2, b2))
    assert y.shape == (B, S, V)
    assert jnp.allclose(y, y_ref, atol=0.15, rtol=0.05)

    # 2) f32 path with small explicit tiles: grid (2, 4) exercises hn
    #    recompute per row tile and reuse across multiple vocab tiles.
    y_f32 = jax.block_until_ready(
        bert_mlm_head(x, w1, b1, gamma, beta, w2, b2,
                      matmul_dtype=None, tm=8, tv=256))
    assert jnp.allclose(y_f32, y_ref, atol=1e-4, rtol=1e-4)

    # 3) bf16 logits output (halves logits writeback bytes) + deeper w2
    #    buffering; compared against the f32 reference with loose tolerance.
    y_bf16 = jax.block_until_ready(
        bert_mlm_head(x, w1, b1, gamma, beta, w2, b2,
                      out_dtype=jnp.bfloat16, w2_buffers=3))
    assert jnp.allclose(y_bf16.astype(jnp.float32), y_ref, atol=0.2, rtol=0.05)

    print("KERNEL_OK")
</pallas_src>

<mosaic_0001>
module attributes {stable_mosaic.version = 11 : i64} {
  func.func @_mlm_head_kernel(%arg0: i32, %arg1: i32, %arg2: memref<32x128xbf16, #tpu.memory_space<vmem>>, %arg3: memref<128x128xbf16, #tpu.memory_space<vmem>>, %arg4: memref<1x128xf32, #tpu.memory_space<vmem>>, %arg5: memref<1x128xf32, #tpu.memory_space<vmem>>, %arg6: memref<1x128xf32, #tpu.memory_space<vmem>>, %arg7: memref<128x1024xbf16, #tpu.memory_space<vmem>>, %arg8: memref<1x1024xf32, #tpu.memory_space<vmem>>, %arg9: memref<32x1024xf32, #tpu.memory_space<vmem>>, %arg10: memref<32x128xbf16, #tpu.memory_space<vmem>>) attributes {dimension_semantics = [#tpu.dimension_semantics<parallel>, #tpu.dimension_semantics<arbitrary>], iteration_bounds = array<i64: 1, 1>, scalar_prefetch = 0 : i64, scratch_operands = 1 : i64, tpu.core_type = #tpu.core_type<tc>, window_params = [{transform_indices = @transform_0, window_bounds = array<i64: 32, 128>}, {pipeline_mode = #tpu.pipeline_mode<synchronous>, transform_indices = @transform_1, window_bounds = array<i64: 128, 128>}, {pipeline_mode = #tpu.pipeline_mode<synchronous>, transform_indices = @transform_2, window_bounds = array<i64: 1, 128>}, {pipeline_mode = #tpu.pipeline_mode<synchronous>, transform_indices = @transform_3, window_bounds = array<i64: 1, 128>}, {pipeline_mode = #tpu.pipeline_mode<synchronous>, transform_indices = @transform_4, window_bounds = array<i64: 1, 128>}, {transform_indices = @transform_5, window_bounds = array<i64: 128, 1024>}, {transform_indices = @transform_6, window_bounds = array<i64: 1, 1024>}, {transform_indices = @transform_7, window_bounds = array<i64: 32, 1024>}]} {
    %c0_i32 = arith.constant 0 : i32
    %0 = arith.cmpi eq, %arg1, %c0_i32 : i32
    %1 = arith.extui %0 : i1 to i32
    %c0_i32_0 = arith.constant 0 : i32
    %2 = arith.cmpi ne, %1, %c0_i32_0 : i32
    scf.if %2 {
      %c0_8 = arith.constant 0 : index
      %c0_9 = arith.constant 0 : index
      %10 = vector.load %arg2[%c0_8, %c0_9] : memref<32x128xbf16, #tpu.memory_space<vmem>>, vector<32x128xbf16>
      %c0_10 = arith.constant 0 : index
      %c0_11 = arith.constant 0 : index
      %11 = vector.load %arg3[%c0_10, %c0_11] : memref<128x128xbf16, #tpu.memory_space<vmem>>, vector<128x128xbf16>
      %cst_12 = arith.constant dense<0.000000e+00> : vector<32x128xf32>
      %12 = tpu.matmul %10, %11, %cst_12 {dimension_numbers = #tpu.dot_dimension_numbers<[1], [0], [0], [1], [0, 0, 1, 1], [], []>} : vector<32x128xbf16>, vector<128x128xbf16>, vector<32x128xf32> -> vector<32x128xf32>
      %c0_13 = arith.constant 0 : index
      %c0_14 = arith.constant 0 : index
      %13 = vector.load %arg4[%c0_13, %c0_14] : memref<1x128xf32, #tpu.memory_space<vmem>>, vector<1x128xf32>
      %14 = vector.broadcast %13 : vector<1x128xf32> to vector<32x128xf32>
      %15 = arith.addf %12, %14 : vector<32x128xf32>
      %cst_15 = arith.constant 5.000000e-01 : f32
      %16 = vector.broadcast %cst_15 : f32 to vector<32x128xf32>
      %17 = arith.mulf %16, %15 : vector<32x128xf32>
      %cst_16 = arith.constant 4.471500e-02 : f32
      %18 = vector.broadcast %cst_16 : f32 to vector<32x128xf32>
      %19 = arith.mulf %18, %15 : vector<32x128xf32>
      %20 = arith.mulf %19, %15 : vector<32x128xf32>
      %21 = arith.mulf %20, %15 : vector<32x128xf32>
      %22 = arith.addf %15, %21 : vector<32x128xf32>
      %cst_17 = arith.constant 0.797884583 : f32
      %23 = vector.broadcast %cst_17 : f32 to vector<32x128xf32>
      %24 = arith.mulf %23, %22 : vector<32x128xf32>
      %25 = math.tanh %24 : vector<32x128xf32>
      %cst_18 = arith.constant 1.000000e+00 : f32
      %26 = vector.broadcast %cst_18 : f32 to vector<32x128xf32>
      %27 = arith.addf %26, %25 : vector<32x128xf32>
      %28 = arith.mulf %17, %27 : vector<32x128xf32>
      %cst_19 = arith.constant dense<0.000000e+00> : vector<32xf32>
      %29 = vector.multi_reduction <add>, %28, %cst_19 [1] : vector<32x128xf32> to vector<32xf32>
      %30 = vector.shape_cast %29 : vector<32xf32> to vector<32x1xf32>
      %cst_20 = arith.constant 1.280000e+02 : f32
      %31 = vector.broadcast %cst_20 : f32 to vector<32x1xf32>
      %32 = arith.divf %30, %31 : vector<32x1xf32>
      %33 = vector.broadcast %32 : vector<32x1xf32> to vector<32x128xf32>
      %34 = arith.subf %28, %33 : vector<32x128xf32>
      %35 = vector.broadcast %32 : vector<32x1xf32> to vector<32x128xf32>
      %36 = arith.subf %28, %35 : vector<32x128xf32>
      %37 = arith.mulf %34, %36 : vector<32x128xf32>
      %cst_21 = arith.constant dense<0.000000e+00> : vector<32xf32>
      %38 = vector.multi_reduction <add>, %37, %cst_21 [1] : vector<32x128xf32> to vector<32xf32>
      %39 = vector.shape_cast %38 : vector<32xf32> to vector<32x1xf32>
      %cst_22 = arith.constant 1.280000e+02 : f32
      %40 = vector.broadcast %cst_22 : f32 to vector<32x1xf32>
      %41 = arith.divf %39, %40 : vector<32x1xf32>
      %42 = vector.broadcast %32 : vector<32x1xf32> to vector<32x128xf32>
      %43 = arith.subf %28, %42 : vector<32x128xf32>
      %cst_23 = arith.constant 1.000000e-10 : f32
      %44 = vector.broadcast %cst_23 : f32 to vector<32x1xf32>
      %45 = arith.addf %41, %44 : vector<32x1xf32>
      %46 = math.rsqrt %45 : vector<32x1xf32>
      %47 = vector.broadcast %46 : vector<32x1xf32> to vector<32x128xf32>
      %48 = arith.mulf %43, %47 : vector<32x128xf32>
      %c0_24 = arith.constant 0 : index
      %c0_25 = arith.constant 0 : index
      %49 = vector.load %arg5[%c0_24, %c0_25] : memref<1x128xf32, #tpu.memory_space<vmem>>, vector<1x128xf32>
      %50 = vector.broadcast %49 : vector<1x128xf32> to vector<32x128xf32>
      %51 = arith.mulf %48, %50 : vector<32x128xf32>
      %c0_26 = arith.constant 0 : index
      %c0_27 = arith.constant 0 : index
      %52 = vector.load %arg6[%c0_26, %c0_27] : memref<1x128xf32, #tpu.memory_space<vmem>>, vector<1x128xf32>
      %53 = vector.broadcast %52 : vector<1x128xf32> to vector<32x128xf32>
      %54 = arith.addf %51, %53 : vector<32x128xf32>
      %55 = arith.truncf %54 : vector<32x128xf32> to vector<32x128xbf16>
      %c0_28 = arith.constant 0 : index
      %c0_29 = arith.constant 0 : index
      %56 = vector.load %arg10[%c0_28, %c0_29] : memref<32x128xbf16, #tpu.memory_space<vmem>>, vector<32x128xbf16>
      tpu.vector_store %arg10[%c0_28, %c0_29], %55 {strides = array<i32>} : memref<32x128xbf16, #tpu.memory_space<vmem>>, vector<32x128xbf16>,
    } else {
    }
    %c0 = arith.constant 0 : index
    %c0_1 = arith.constant 0 : index
    %3 = vector.load %arg10[%c0, %c0_1] : memref<32x128xbf16, #tpu.memory_space<vmem>>, vector<32x128xbf16>
    %c0_2 = arith.constant 0 : index
    %c0_3 = arith.constant 0 : index
    %4 = vector.load %arg7[%c0_2, %c0_3] : memref<128x1024xbf16, #tpu.memory_space<vmem>>, vector<128x1024xbf16>
    %cst = arith.constant dense<0.000000e+00> : vector<32x1024xf32>
    %5 = tpu.matmul %3, %4, %cst {dimension_numbers = #tpu.dot_dimension_numbers<[1], [0], [0], [1], [0, 0, 1, 1], [], []>} : vector<32x128xbf16>, vector<128x1024xbf16>, vector<32x1024xf32> -> vector<32x1024xf32>
    %c0_4 = arith.constant 0 : index
    %c0_5 = arith.constant 0 : index
    %6 = vector.load %arg8[%c0_4, %c0_5] : memref<1x1024xf32, #tpu.memory_space<vmem>>, vector<1x1024xf32>
    %7 = vector.broadcast %6 : vector<1x1024xf32> to vector<32x1024xf32>
    %8 = arith.addf %5, %7 : vector<32x1024xf32>
    %c0_6 = arith.constant 0 : index
    %c0_7 = arith.constant 0 : index
    %9 = vector.load %arg9[%c0_6, %c0_7] : memref<32x1024xf32, #tpu.memory_space<vmem>>, vector<32x1024xf32>
    tpu.vector_store %arg9[%c0_6, %c0_7], %8 {strides = array<i32>} : memref<32x1024xf32, #tpu.memory_space<vmem>>, vector<32x1024xf32>,
    return
  }
  func.func @transform_0(%arg0: i32, %arg1: i32) -> (i32, i32) {
    %c0_i32 = arith.constant 0 : i32
    %c0_i32_0 = arith.constant 0 : i32
    return %arg0, %c0_i32 : i32, i32
  }
  func.func @transform_1(%arg0: i32, %arg1: i32) -> (i32, i32) {
    %c0_i32 = arith.constant 0 : i32
    %c0_i32_0 = arith.constant 0 : i32
    %c0_i32_1 = arith.constant 0 : i32
    return %c0_i32, %c0_i32_0 : i32, i32
  }
  func.func @transform_2(%arg0: i32, %arg1: i32) -> (i32, i32) {
    %c0_i32 = arith.constant 0 : i32
    %c0_i32_0 = arith.constant 0 : i32
    %c0_i32_1 = arith.constant 0 : i32
    return %c0_i32, %c0_i32_0 : i32, i32
  }
  func.func @transform_3(%arg0: i32, %arg1: i32) -> (i32, i32) {
    %c0_i32 = arith.constant 0 : i32
    %c0_i32_0 = arith.constant 0 : i32
    %c0_i32_1 = arith.constant 0 : i32
    return %c0_i32, %c0_i32_0 : i32, i32
  }
  func.func @transform_4(%arg0: i32, %arg1: i32) -> (i32, i32) {
    %c0_i32 = arith.constant 0 : i32
    %c0_i32_0 = arith.constant 0 : i32
    %c0_i32_1 = arith.constant 0 : i32
    return %c0_i32, %c0_i32_0 : i32, i32
  }
  func.func @transform_5(%arg0: i32, %arg1: i32) -> (i32, i32) {
    %c0_i32 = arith.constant 0 : i32
    %c0_i32_0 = arith.constant 0 : i32
    return %c0_i32, %arg1 : i32, i32
  }
  func.func @transform_6(%arg0: i32, %arg1: i32) -> (i32, i32) {
    %c0_i32 = arith.constant 0 : i32
    %c0_i32_0 = arith.constant 0 : i32
    return %c0_i32, %arg1 : i32, i32
  }
  func.func @transform_7(%arg0: i32, %arg1: i32) -> (i32, i32) {
    %c0_i32 = arith.constant 0 : i32
    return %arg0, %arg1 : i32, i32
  }
}

module attributes {stable_mosaic.version = 11 : i64} {
  func.func @_mlm_head_kernel(%arg0: i32, %arg1: i32, %arg2: memref<32x128xbf16, #tpu.memory_space<vmem>>, %arg3: memref<128x128xbf16, #tpu.memory_space<vmem>>, %arg4: memref<1x128xf32, #tpu.memory_space<vmem>>, %arg5: memref<1x128xf32, #tpu.memory_space<vmem>>, %arg6: memref<1x128xf32, #tpu.memory_space<vmem>>, %arg7: memref<128x1024xbf16, #tpu.memory_space<vmem>>, %arg8: memref<1x1024xf32, #tpu.memory_space<vmem>>, %arg9: memref<32x1024xf32, #tpu.memory_space<vmem>>, %arg10: memref<32x128xbf16, #tpu.memory_space<vmem>>) attributes {dimension_semantics = [#tpu.dimension_semantics<parallel>, #tpu.dimension_semantics<arbitrary>], iteration_bounds = array<i64: 1, 1>, scalar_prefetch = 0 : i64, scratch_operands = 1 : i64, tpu.core_type = #tpu.core_type<tc>, window_params = [{transform_indices = @transform_0, window_bounds = array<i64: 32, 128>}, {pipeline_mode = #tpu.pipeline_mode<synchronous>, transform_indices = @transform_1, window_bounds = array<i64: 128, 128>}, {pipeline_mode = #tpu.pipeline_mode<synchronous>, transform_indices = @transform_2, window_bounds = array<i64: 1, 128>}, {pipeline_mode = #tpu.pipeline_mode<synchronous>, transform_indices = @transform_3, window_bounds = array<i64: 1, 128>}, {pipeline_mode = #tpu.pipeline_mode<synchronous>, transform_indices = @transform_4, window_bounds = array<i64: 1, 128>}, {transform_indices = @transform_5, window_bounds = array<i64: 128, 1024>}, {transform_indices = @transform_6, window_bounds = array<i64: 1, 1024>}, {transform_indices = @transform_7, window_bounds = array<i64: 32, 1024>}]} {
    %c0_i32 = arith.constant 0 : i32
    %0 = arith.cmpi eq, %arg1, %c0_i32 : i32
    %1 = arith.extui %0 : i1 to i32
    %c0_i32_0 = arith.constant 0 : i32
    %2 = arith.cmpi ne, %1, %c0_i32_0 : i32
    scf.if %2 {
      %c0_8 = arith.constant 0 : index
      %c0_9 = arith.constant 0 : index
      %10 = vector.load %arg2[%c0_8, %c0_9] : memref<32x128xbf16, #tpu.memory_space<vmem>>, vector<32x128xbf16>
      %c0_10 = arith.constant 0 : index
      %c0_11 = arith.constant 0 : index
      %11 = vector.load %arg3[%c0_10, %c0_11] : memref<128x128xbf16, #tpu.memory_space<vmem>>, vector<128x128xbf16>
      %cst_12 = arith.constant dense<0.000000e+00> : vector<32x128xf32>
      %12 = tpu.matmul %10, %11, %cst_12 {dimension_numbers = #tpu.dot_dimension_numbers<[1], [0], [0], [1], [0, 0, 1, 1], [], []>} : vector<32x128xbf16>, vector<128x128xbf16>, vector<32x128xf32> -> vector<32x128xf32>
      %c0_13 = arith.constant 0 : index
      %c0_14 = arith.constant 0 : index
      %13 = vector.load %arg4[%c0_13, %c0_14] : memref<1x128xf32, #tpu.memory_space<vmem>>, vector<1x128xf32>
      %14 = vector.broadcast %13 : vector<1x128xf32> to vector<32x128xf32>
      %15 = arith.addf %12, %14 : vector<32x128xf32>
      %cst_15 = arith.constant 5.000000e-01 : f32
      %16 = vector.broadcast %cst_15 : f32 to vector<32x128xf32>
      %17 = arith.mulf %16, %15 : vector<32x128xf32>
      %cst_16 = arith.constant 4.471500e-02 : f32
      %18 = vector.broadcast %cst_16 : f32 to vector<32x128xf32>
      %19 = arith.mulf %18, %15 : vector<32x128xf32>
      %20 = arith.mulf %19, %15 : vector<32x128xf32>
      %21 = arith.mulf %20, %15 : vector<32x128xf32>
      %22 = arith.addf %15, %21 : vector<32x128xf32>
      %cst_17 = arith.constant 0.797884583 : f32
      %23 = vector.broadcast %cst_17 : f32 to vector<32x128xf32>
      %24 = arith.mulf %23, %22 : vector<32x128xf32>
      %25 = math.tanh %24 : vector<32x128xf32>
      %cst_18 = arith.constant 1.000000e+00 : f32
      %26 = vector.broadcast %cst_18 : f32 to vector<32x128xf32>
      %27 = arith.addf %26, %25 : vector<32x128xf32>
      %28 = arith.mulf %17, %27 : vector<32x128xf32>
      %cst_19 = arith.constant dense<0.000000e+00> : vector<32xf32>
      %29 = vector.multi_reduction <add>, %28, %cst_19 [1] : vector<32x128xf32> to vector<32xf32>
      %30 = vector.shape_cast %29 : vector<32xf32> to vector<32x1xf32>
      %cst_20 = arith.constant 1.280000e+02 : f32
      %31 = vector.broadcast %cst_20 : f32 to vector<32x1xf32>
      %32 = arith.divf %30, %31 : vector<32x1xf32>
      %33 = vector.broadcast %32 : vector<32x1xf32> to vector<32x128xf32>
      %34 = arith.subf %28, %33 : vector<32x128xf32>
      %35 = vector.broadcast %32 : vector<32x1xf32> to vector<32x128xf32>
      %36 = arith.subf %28, %35 : vector<32x128xf32>
      %37 = arith.mulf %34, %36 : vector<32x128xf32>
      %cst_21 = arith.constant dense<0.000000e+00> : vector<32xf32>
      %38 = vector.multi_reduction <add>, %37, %cst_21 [1] : vector<32x128xf32> to vector<32xf32>
      %39 = vector.shape_cast %38 : vector<32xf32> to vector<32x1xf32>
      %cst_22 = arith.constant 1.280000e+02 : f32
      %40 = vector.broadcast %cst_22 : f32 to vector<32x1xf32>
      %41 = arith.divf %39, %40 : vector<32x1xf32>
      %42 = vector.broadcast %32 : vector<32x1xf32> to vector<32x128xf32>
      %43 = arith.subf %28, %42 : vector<32x128xf32>
      %cst_23 = arith.constant 1.000000e-10 : f32
      %44 = vector.broadcast %cst_23 : f32 to vector<32x1xf32>
      %45 = arith.addf %41, %44 : vector<32x1xf32>
      %46 = math.rsqrt %45 : vector<32x1xf32>
      %47 = vector.broadcast %46 : vector<32x1xf32> to vector<32x128xf32>
      %48 = arith.mulf %43, %47 : vector<32x128xf32>
      %c0_24 = arith.constant 0 : index
      %c0_25 = arith.constant 0 : index
      %49 = vector.load %arg5[%c0_24, %c0_25] : memref<1x128xf32, #tpu.memory_space<vmem>>, vector<1x128xf32>
      %50 = vector.broadcast %49 : vector<1x128xf32> to vector<32x128xf32>
      %51 = arith.mulf %48, %50 : vector<32x128xf32>
      %c0_26 = arith.constant 0 : index
      %c0_27 = arith.constant 0 : index
      %52 = vector.load %arg6[%c0_26, %c0_27] : memref<1x128xf32, #tpu.memory_space<vmem>>, vector<1x128xf32>
      %53 = vector.broadcast %52 : vector<1x128xf32> to vector<32x128xf32>
      %54 = arith.addf %51, %53 : vector<32x128xf32>
      %55 = arith.truncf %54 : vector<32x128xf32> to vector<32x128xbf16>
      %c0_28 = arith.constant 0 : index
      %c0_29 = arith.constant 0 : index
      %56 = vector.load %arg10[%c0_28, %c0_29] : memref<32x128xbf16, #tpu.memory_space<vmem>>, vector<32x128xbf16>
      tpu.vector_store %arg10[%c0_28, %c0_29], %55 {strides = array<i32>} : memref<32x128xbf16, #tpu.memory_space<vmem>>, vector<32x128xbf16>,
    } else {
    }
    %c0 = arith.constant 0 : index
    %c0_1 = arith.constant 0 : index
    %3 = vector.load %arg10[%c0, %c0_1] : memref<32x128xbf16, #tpu.memory_space<vmem>>, vector<32x128xbf16>
    %c0_2 = arith.constant 0 : index
    %c0_3 = arith.constant 0 : index
    %4 = vector.load %arg7[%c0_2, %c0_3] : memref<128x1024xbf16, #tpu.memory_space<vmem>>, vector<128x1024xbf16>
    %cst = arith.constant dense<0.000000e+00> : vector<32x1024xf32>
    %5 = tpu.matmul %3, %4, %cst {dimension_numbers = #tpu.dot_dimension_numbers<[1], [0], [0], [1], [0, 0, 1, 1], [], []>} : vector<32x128xbf16>, vector<128x1024xbf16>, vector<32x1024xf32> -> vector<32x1024xf32>
    %c0_4 = arith.constant 0 : index
    %c0_5 = arith.constant 0 : index
    %6 = vector.load %arg8[%c0_4, %c0_5] : memref<1x1024xf32, #tpu.memory_space<vmem>>, vector<1x1024xf32>
    %7 = vector.broadcast %6 : vector<1x1024xf32> to vector<32x1024xf32>
    %8 = arith.addf %5, %7 : vector<32x1024xf32>
    %c0_6 = arith.constant 0 : index
    %c0_7 = arith.constant 0 : index
    %9 = vector.load %arg9[%c0_6, %c0_7] : memref<32x1024xf32, #tpu.memory_space<vmem>>, vector<32x1024xf32>
    tpu.vector_store %arg9[%c0_6, %c0_7], %8 {strides = array<i32>} : memref<32x1024xf32, #tpu.memory_space<vmem>>, vector<32x1024xf32>,
    return
  }
  func.func @transform_0(%arg0: i32, %arg1: i32) -> (i32, i32) {
    %c0_i32 = arith.constant 0 : i32
    %c0_i32_0 = arith.constant 0 : i32
    return %arg0, %c0_i32 : i32, i32
  }
  func.func @transform_1(%arg0: i32, %arg1: i32) -> (i32, i32) {
    %c0_i32 = arith.constant 0 : i32
    %c0_i32_0 = arith.constant 0 : i32
    %c0_i32_1 = arith.constant 0 : i32
    return %c0_i32, %c0_i32_0 : i32, i32
  }
  func.func @transform_2(%arg0: i32, %arg1: i32) -> (i32, i32) {
    %c0_i32 = arith.constant 0 : i32
    %c0_i32_0 = arith.constant 0 : i32
    %c0_i32_1 = arith.constant 0 : i32
    return %c0_i32, %c0_i32_0 : i32, i32
  }
  func.func @transform_3(%arg0: i32, %arg1: i32) -> (i32, i32) {
    %c0_i32 = arith.constant 0 : i32
    %c0_i32_0 = arith.constant 0 : i32
    %c0_i32_1 = arith.constant 0 : i32
    return %c0_i32, %c0_i32_0 : i32, i32
  }
  func.func @transform_4(%arg0: i32, %arg1: i32) -> (i32, i32) {
    %c0_i32 = arith.constant 0 : i32
    %c0_i32_0 = arith.constant 0 : i32
    %c0_i32_1 = arith.constant 0 : i32
    return %c0_i32, %c0_i32_0 : i32, i32
  }
  func.func @transform_5(%arg0: i32, %arg1: i32) -> (i32, i32) {
    %c0_i32 = arith.constant 0 : i32
    %c0_i32_0 = arith.constant 0 : i32
    return %c0_i32, %arg1 : i32, i32
  }
  func.func @transform_6(%arg0: i32, %arg1: i32) -> (i32, i32) {
    %c0_i32 = arith.constant 0 : i32
    %c0_i32_0 = arith.constant 0 : i32
    return %c0_i32, %arg1 : i32, i32
  }
  func.func @transform_7(%arg0: i32, %arg1: i32) -> (i32, i32) {
    %c0_i32 = arith.constant 0 : i32
    return %arg0, %arg1 : i32, i32
  }
}

</mosaic_0001>

<bundles_post_ra>
// kernel: tpu_custom_call.1
= control target key start
LH: loop header
LB: loop body
LE: loop exit
PB: predicated region body
PF: predicated region fallthrough
CT: control target
= control target key end

     0   :  { %12 = vsyncpa [#allocation4], 0  ;;  %s1736_s0 = inlined_call_operand.hbm [shape: bf16[32,128], index: 0, kind: input, shape index: {}]   ;;  %s1737_s1 = inlined_call_operand.hbm [shape: bf16[128,128], index: 1, kind: input, shape index: {}]   ;;  %s1738_s2 = inlined_call_operand.vmem [shape: f32[1,128], index: 2, kind: input, shape index: {}]   ;;  %s1739_s3 = inlined_call_operand.vmem [shape: f32[1,128], index: 3, kind: input, shape index: {}]   ;;  %s1740_s4 = inlined_call_operand.vmem [shape: f32[1,128], index: 4, kind: input, shape index: {}]   ;;  %s1741_s5 = inlined_call_operand.hbm [shape: bf16[128,1024], index: 5, kind: input, shape index: {}]   ;;  %s1742_s6 = inlined_call_operand.hbm [shape: f32[1,1024], index: 6, kind: input, shape index: {}]   ;;  %s1743_s7 = inlined_call_operand.hbm [shape: f32[32,1024], index: 7, kind: output, shape index: {}]  }
   0x1   :  { %13 = vsyncpa [#allocation7], 0 }
   0x2   :  { %14 = vsyncpa [#allocation10], 0 }
   0x3   :  { %15 = vsyncpa [#allocation5], 0  ;;  %s33_s26 = sshll.u32 %s1737_s1, 4  ;;  %s1524_s27 = smov [#allocation6]   ;;  %s34_s26 = int_to_ptr.hbm [resolvable:$true] %s33_s26 }
   0x4   :  { %s35_s28 = sshll.u32 %s1524_s27, 4  ;;  %s20_s8 = sshll.u32 %s1736_s0, 4  ;;  %s36_s28 = int_to_ptr.vmem [resolvable:$true] %s35_s28  ;;  %s21_s8 = int_to_ptr.hbm [resolvable:$true] %s20_s8 }
   0x5   :  { %s1525_s9 = smov 64   ;;  %s1526_s10 = smov 4  }
   0x6   :  { %41 = dma.hbm_to_vmem [thread:$0]  %s34_s26, 1024, %s36_s28, [#allocation7], %s1525_s9, %s1525_s9, %s1526_s10  }
   0x7   :  { %s1527_s11 = smov [#allocation3]   ;;  %s52_s1 = sshll.u32 %s1741_s5, 4  ;;  %s53_s1 = int_to_ptr.hbm [resolvable:$true] %s52_s1 }
   0x8   :  { %s22_s12 = sshll.u32 %s1527_s11, 4  ;;  %s1528_s15 = smov [#allocation8]   ;;  %s23_s12 = int_to_ptr.vmem [resolvable:$true] %s22_s12 }
   0x9   :  { %28 = dma.hbm_to_vmem [thread:$0]  %s21_s8, 256, %s23_s12, [#allocation4], %s1525_s9, %s1525_s9, %s1526_s10  }
   0xa   :  { %s54_s16 = sshll.u32 %s1528_s15, 4  ;;  %s66_s18 = sshll.u32 %s1742_s6, 4  ;;  %s55_s16 = int_to_ptr.vmem [resolvable:$true] %s54_s16  ;;  %s67_s18 = int_to_ptr.hbm [resolvable:$true] %s66_s18 }
   0xb   :  { %s1529_s19 = smov 512   ;;  %s1530_s20 = smov 32  }
   0xc   :  { %60 = dma.hbm_to_vmem [thread:$0]  %s53_s1, 8192, %s55_s16, [#allocation7], %s1529_s19, %s1529_s19, %s1530_s20  }
   0xd   :  { %s1531_s21 = smov [#allocation9]  }
   0xe   :  { %s68_s22 = sshll.u32 %s1531_s21, 4  ;;  %s69_s22 = int_to_ptr.vmem [resolvable:$true] %s68_s22 }
   0xf   :  { %71 = dma.hbm_to_vmem [thread:$0]  %s67_s18, 128, %s69_s22, [#allocation10]  }
  0x10   :  { %1516 = dma.done.wait [#allocation4], 256  }
  0x11   :  { %1517 = vsyncadd [#allocation4], 4294967040 }
  0x12   :  { %1518 = dma.done.wait [#allocation7], 9216  }
  0x13   :  { %1519 = vsyncadd [#allocation7], 4294958080 }
  0x14   :  { %1520 = dma.done.wait [#allocation10], 128  }
  0x15   :  { %1521 = vsyncadd [#allocation10], 4294967168  ;;  %v1278_v0 = vld [vmem:[#allocation6 + $0x38] sm:$0xff]  ;;  %v1277_v1 = vld [vmem:[#allocation6 + $0x30] sm:$0xff]  ;;  %v1532_v55 = vmov 128.0   ;;  %s950_s28 = sshll.u32 %s1743_s7, 4  ;;  %s951_s28 = int_to_ptr.hbm [resolvable:$true] %s950_s28 }
  0x16   :  { %176 = vmatpush.bf16.msra.mxu0 %v1278_v0  ;;  %v1276_v2 = vld [vmem:[#allocation6 + $0x28] sm:$0xff]  ;;  %v1275_v3 = vld [vmem:[#allocation6 + $0x20] sm:$0xff]  ;;  %v1274_v4 = vld [vmem:[#allocation6 + $0x18] sm:$0xff]  ;;  %s1534_s29 = smov 1024  }
  0x17   :  { %v1273_v5 = vld [vmem:[#allocation6 + $0x10] sm:$0xff]  ;;  %v1272_v6 = vld [vmem:[#allocation6 + $0x8] sm:$0xff]  ;;  %v1271_v7 = vld [vmem:[#allocation6] sm:$0xff] }
  0x18   :  { %v1269_v8 = vld [vmem:[#allocation3] sm:$0xff]  ;;  %v1270_v9 = vld [vmem:[#allocation3 + $0x8] sm:$0xff]  ;;  %v1375_v10 = vld [vmem:[%s1738_s2] ss:$0 sm:$0xff] }
  0x1a   :  { %177 = vmatpush.bf16.msra.mxu0 %v1277_v1 }
  0x1e   :  { %178 = vmatpush.bf16.msra.mxu0 %v1276_v2 }
  0x22   :  { %179 = vmatpush.bf16.msra.mxu0 %v1275_v3 }
  0x26   :  { %180 = vmatpush.bf16.msra.mxu0 %v1274_v4 }
  0x2a   :  { %181 = vmatpush.bf16.msra.mxu0 %v1273_v5 }
  0x2e   :  { %182 = vmatpush.bf16.msra.mxu0 %v1272_v6 }
  0x32   :  { %183 = vmatpush.bf16.msra.mxu0 %v1271_v7 }
  0x35   :  { %184 = vmatmul.bf16.vlgmr.msra.gmra.mxu0 %v1269_v8 }
  0x45   :  { %189 = vmatmul.bf16.gmra.mxu0 %v1270_v9 }
  0xb2   :  { %v185_v11 = vpop.f32.mrf.mxu0 }
  0xb3   :  { %v186_v12 = vadd.f32 %v1375_v10, %v185_v11 }
  0xb5   :  { %v199_v13 = vmul.f32 0.044715, %v186_v12  ;;  %v195_v29 = vmul.f32 0.5, %v186_v12 }
  0xb7   :  { %v203_v14 = vmul.f32 %v199_v13, %v186_v12 }
  0xb9   :  { %v207_v15 = vmul.f32 %v203_v14, %v186_v12  ;;  %v1239_v14 = vld [vmem:[#allocation8 + $0x1c0] sm:$0xf] }
  0xba   :  { %v187_v16 = vpop.f32.mrf.mxu0 }
  0xbb   :  { %v188_v17 = vadd.f32 %v1375_v10, %v187_v16  ;;  %v211_v18 = vadd.f32 %v207_v15, %v186_v12  ;;  %v1341_v15 = vld [vmem:[#allocation8 + $0x1dc] sm:$0xf0]  ;;  %v1337_v16 = vld [vmem:[#allocation8 + $0x1c4] sm:$0xf] }
  0xbd   :  { %v215_v19 = vmul.f32 0.7978846, %v211_v18  ;;  %v200_v20 = vmul.f32 0.044715, %v188_v17  ;;  %v196_v40 = vmul.f32 0.5, %v188_v17 }
  0xbe   :  { %v1241_v18 = vld [vmem:[#allocation8 + $0x1e0] sm:$0xf0] }
  0xbf   :  { %1378 = vtanh.f32 %v215_v19  ;;  %v204_v21 = vmul.f32 %v200_v20, %v188_v17  ;;  %v1247_v19 = vld [vmem:[#allocation8 + $0x1c8] sm:$0xf] }
  0xc0   :  { %v1342_v20 = vld [vmem:[#allocation8 + $0x1e4] sm:$0xf0] }
  0xc1   :  { %v208_v22 = vmul.f32 %v204_v21, %v188_v17  ;;  %v1244_v21 = vor.u32 %v1337_v16, %v1241_v18  ;;  %v1301_v18 = vld [vmem:[#allocation8 + $0x9c] sm:$0xf0] }
  0xc2   :  { %v190_v23 = vpop.f32.mrf.mxu0 }
  0xc3   :  { %v191_v24 = vadd.f32 %v1375_v10, %v190_v23  ;;  %v212_v25 = vadd.f32 %v208_v22, %v188_v17  ;;  %v1240_v17 = vor.u32 %v1341_v15, %v1239_v14  ;;  %v1248_v22 = vor.u32 %v1342_v20, %v1247_v19  ;;  %v1338_v23 = vld [vmem:[#allocation8 + $0x1cc] sm:$0xf]  ;;  %779 = vmatpush.bf16.msra.mxu2 %v1244_v21  ;;  %v1297_v19 = vld [vmem:[#allocation8 + $0x84] sm:$0xf] }
  0xc4   :  { %v1121_v14 = vld [vmem:[#allocation8 + $0xe8] sm:$0xf0] }
  0xc5   :  { %v1379_v26 = vpop.eup %1378  ;;  %v216_v27 = vmul.f32 0.7978846, %v212_v25  ;;  %v201_v28 = vmul.f32 0.044715, %v191_v24  ;;  %v197_v48 = vmul.f32 0.5, %v191_v24  ;;  %760 = vmatpush.bf16.msra.mxu1 %v1240_v17  ;;  %798 = vmatpush.bf16.msra.mxu3 %v1248_v22 }
  0xc6   :  { %v223_v30 = vadd.f32 1.0, %v1379_v26  ;;  %v1207_v26 = vld [vmem:[#allocation8 + $0x180] sm:$0xf]  ;;  %v1081_v22 = vld [vmem:[#allocation8 + $0xa0] sm:$0xf0] }
  0xc7   :  { %1380 = vtanh.f32 %v216_v27  ;;  %v205_v31 = vmul.f32 %v201_v28, %v191_v24  ;;  %v1333_v27 = vld [vmem:[#allocation8 + $0x19c] sm:$0xf0]  ;;  %v1329_v28 = vld [vmem:[#allocation8 + $0x184] sm:$0xf] }
  0xc8   :  { %v227_v32 = vmul.f32 %v223_v30, %v195_v29  ;;  %v1208_v29 = vor.u32 %v1333_v27, %v1207_v26  ;;  %v1209_v30 = vld [vmem:[#allocation8 + $0x1a0] sm:$0xf0]  ;;  %v1079_v17 = vld [vmem:[#allocation8 + $0x80] sm:$0xf]  ;;  %v1298_v26 = vld [vmem:[#allocation8 + $0x8c] sm:$0xf] }
  0xc9   :  { %v209_v33 = vmul.f32 %v205_v31, %v191_v24  ;;  %v1215_v31 = vld [vmem:[#allocation8 + $0x188] sm:$0xf]  ;;  %v1080_v21 = vor.u32 %v1301_v18, %v1079_v17  ;;  %v1089_v27 = vld [vmem:[#allocation8 + $0xa8] sm:$0xf0] }
  0xca   :  { %v192_v34 = vpop.f32.mrf.mxu0  ;;  %231 = vadd.xlane.f32.xlu0 %v227_v32  ;;  %761 = vmatpush.bf16.msra.mxu1 %v1208_v29  ;;  %v1092_v29 = vor.u32 %v1298_v26, %v1089_v27  ;;  %v1225_v26 = vld [vmem:[#allocation8 + $0x1b0] sm:$0xf0]  ;;  %v1231_v27 = vld [vmem:[#allocation8 + $0x198] sm:$0xf] }
  0xcb   :  { %v193_v35 = vadd.f32 %v1375_v10, %v192_v34  ;;  %v213_v36 = vadd.f32 %v209_v33, %v191_v24  ;;  %v1249_v24 = vld [vmem:[#allocation8 + $0x1e8] sm:$0xf0]  ;;  %v1212_v33 = vor.u32 %v1329_v28, %v1209_v30  ;;  %v1047_v30 = vld [vmem:[#allocation8 + $0x40] sm:$0xf] }
  0xcc   :  { %v1252_v25 = vor.u32 %v1338_v23, %v1249_v24  ;;  %v1087_v23 = vld [vmem:[#allocation8 + $0x88] sm:$0xf]  ;;  %v1084_v24 = vor.u32 %v1297_v19, %v1081_v22  ;;  %v1223_v19 = vld [vmem:[#allocation8 + $0x190] sm:$0xf] }
  0xcd   :  { %v1381_v37 = vpop.eup %1380  ;;  %v217_v38 = vmul.f32 0.7978846, %v213_v36  ;;  %v202_v39 = vmul.f32 0.044715, %v193_v35  ;;  %v198_v52 = vmul.f32 0.5, %v193_v35  ;;  %780 = vmatpush.bf16.msra.mxu2 %v1212_v33 }
  0xce   :  { %v224_v41 = vadd.f32 1.0, %v1381_v37  ;;  %817 = vmatpush.bf16.msrb.mxu0 %v1252_v25  ;;  %v1217_v36 = vld [vmem:[#allocation8 + $0x1a8] sm:$0xf0]  ;;  %v1302_v25 = vld [vmem:[#allocation8 + $0xa4] sm:$0xf0] }
  0xcf   :  { %1382 = vtanh.f32 %v217_v38  ;;  %v206_v42 = vmul.f32 %v202_v39, %v193_v35  ;;  %v1175_v38 = vld [vmem:[#allocation8 + $0x140] sm:$0xf]  ;;  %v1088_v28 = vor.u32 %v1302_v25, %v1087_v23  ;;  %v1331_v25 = vld [vmem:[#allocation8 + $0x194] sm:$0xf] }
  0xd0   :  { %v228_v43 = vmul.f32 %v224_v41, %v196_v40  ;;  %v1325_v39 = vld [vmem:[#allocation8 + $0x15c] sm:$0xf0]  ;;  %v1321_v40 = vld [vmem:[#allocation8 + $0x144] sm:$0xf] }
  0xd1   :  { %v210_v44 = vmul.f32 %v206_v42, %v193_v35  ;;  %v1176_v41 = vor.u32 %v1325_v39, %v1175_v38  ;;  %v1177_v42 = vld [vmem:[#allocation8 + $0x160] sm:$0xf0] }
  0xd2   :  { %233 = vadd.xlane.f32.xlu0 %v228_v43 }
  0xd3   :  { %v214_v45 = vadd.f32 %v210_v44, %v193_v35  ;;  %v1330_v35 = vld [vmem:[#allocation8 + $0x18c] sm:$0xf]  ;;  %v1326_v44 = vld [vmem:[#allocation8 + $0x164] sm:$0xf0]  ;;  %762 = vmatpush.bf16.msra.mxu1 %v1176_v41 }
  0xd4   :  { %v1220_v37 = vor.u32 %v1330_v35, %v1217_v36  ;;  %v1055_v35 = vld [vmem:[#allocation8 + $0x48] sm:$0xf]  ;;  %v1057_v41 = vld [vmem:[#allocation8 + $0x68] sm:$0xf0] }
  0xd5   :  { %v1383_v46 = vpop.eup %1382  ;;  %v218_v47 = vmul.f32 0.7978846, %v214_v45  ;;  %v1180_v45 = vor.u32 %v1321_v40, %v1177_v42  ;;  %v1294_v36 = vld [vmem:[#allocation8 + $0x64] sm:$0xf0]  ;;  %v1290_v40 = vld [vmem:[#allocation8 + $0x4c] sm:$0xf] }
  0xd6   :  { %v225_v49 = vadd.f32 1.0, %v1383_v46  ;;  %818 = vmatpush.bf16.msrb.mxu0 %v1220_v37  ;;  %v1056_v39 = vor.u32 %v1294_v36, %v1055_v35  ;;  %v1327_v36 = vld [vmem:[#allocation8 + $0x16c] sm:$0xf0] }
  0xd7   :  { %1384 = vtanh.f32 %v218_v47  ;;  %v1322_v47 = vld [vmem:[#allocation8 + $0x14c] sm:$0xf]  ;;  %781 = vmatpush.bf16.msra.mxu2 %v1180_v45  ;;  %v1285_v45 = vld [vmem:[#allocation8 + $0x1c] sm:$0xf0] }
  0xd8   :  { %v229_v50 = vmul.f32 %v225_v49, %v197_v48  ;;  %1386 = vrcp.f32 %v1532_v55  ;;  %v1185_v48 = vld [vmem:[#allocation8 + $0x168] sm:$0xf0]  ;;  %v1151_v55 = vld [vmem:[#allocation8 + $0x108] sm:$0xf] }
  0xd9   :  { %v1188_v49 = vor.u32 %v1322_v47, %v1185_v48 }
  0xda   :  { %235 = vadd.xlane.f32.xlu1 %v229_v50 }
  0xdb   :  { %819 = vmatpush.bf16.msrb.mxu0 %v1188_v49 }
  0xdd   :  { %v1385_v51 = vpop.eup %1384 }
  0xde   :  { %v226_v53 = vadd.f32 1.0, %v1385_v51  ;;  %v1387_v56 = vpop.eup %1386  ;;  %v1317_v51 = vld [vmem:[#allocation8 + $0x11c] sm:$0xf0] }
  0xdf   :  { %v240_v57 = vmul.f32 128.0, %v1387_v56  ;;  %vm244_vm0 = vweird.f32 %v1387_v56 }
  0xe0   :  { %v230_v54 = vmul.f32 %v226_v53, %v198_v52  ;;  %v1313_v52 = vld [vmem:[#allocation8 + $0x104] sm:$0xf] }
  0xe1   :  { %v241_v58 = vsub.f32 1.0, %v240_v57 }
  0xe2   :  { %237 = vadd.xlane.f32.xlu1 %v230_v54 }
  0xe3   :  { %v242_v59 = vmul.f32 %v1387_v56, %v241_v58 }
  0xe5   :  { %v243_v60 = vadd.f32 %v1387_v56, %v242_v59  ;;  %v1314_v59 = vld [vmem:[#allocation8 + $0x10c] sm:$0xf] }
  0xe7   :  { %v1594_v61 = vsel %vm244_vm0, %v1387_v56, %v243_v60  ;;  %v1318_v56 = vld [vmem:[#allocation8 + $0x124] sm:$0xf0]  ;;  %v1153_v60 = vld [vmem:[#allocation8 + $0x128] sm:$0xf0] }
  0xe8   :  { %v1152_v58 = vor.u32 %v1318_v56, %v1151_v55  ;;  %v1282_v55 = vld [vmem:[#allocation8 + $0xc] sm:$0xf] }
  0xe9   :  { %v1025_v56 = vld [vmem:[#allocation8 + $0x28] sm:$0xf0] }
 0x13d   :  { %v232_v62 = vpop.xlane.xlu0 %231 }
 0x13e   :  { %v246_v63 = vmul.f32 %v1594_v61, %v232_v62  ;;  %v1156_v62 = vor.u32 %v1314_v59, %v1153_v60  ;;  %v1255_v60 = vld [vmem:[#allocation8 + $0x1d0] sm:$0xf] }
 0x140   :  { %v1597_v0 = vsub.f32 %v227_v32, %v246_v63  ;;  %v1334_v32 = vld [vmem:[#allocation8 + $0x1a4] sm:$0xf0]  ;;  %v1111_v63 = vld [vmem:[#allocation8 + $0xc0] sm:$0xf]  ;;  %820 = vmatpush.bf16.msrb.mxu0 %v1156_v62  ;;  %v1343_v62 = vld [vmem:[#allocation8 + $0x1ec] sm:$0xf0] }
 0x141   :  { %v1216_v34 = vor.u32 %v1334_v32, %v1215_v31  ;;  %v1293_v31 = vld [vmem:[#allocation8 + $0x5c] sm:$0xf0]  ;;  %v1289_v32 = vld [vmem:[#allocation8 + $0x44] sm:$0xf] }
 0x142   :  { %v254_v1 = vmul.f32 %v1597_v0, %v1597_v0  ;;  %v1048_v33 = vor.u32 %v1293_v31, %v1047_v30  ;;  %v1332_v30 = vld [vmem:[#allocation8 + $0x19c] sm:$0xf]  ;;  %v1095_v31 = vld [vmem:[#allocation8 + $0x90] sm:$0xf] }
 0x143   :  { %799 = vmatpush.bf16.msra.mxu3 %v1216_v34  ;;  %v1049_v34 = vld [vmem:[#allocation8 + $0x60] sm:$0xf0] }
 0x144   :  { %258 = vadd.xlane.f32.xlu2 %v254_v1  ;;  %v1309_v1 = vld [vmem:[#allocation8 + $0xdc] sm:$0xf0]  ;;  %v1052_v38 = vor.u32 %v1289_v32, %v1049_v34  ;;  %v1233_v34 = vld [vmem:[#allocation8 + $0x1b8] sm:$0xf0] }
 0x145   :  { %v234_v2 = vpop.xlane.xlu0 %233  ;;  %v1650_v35 = vor.u32 %v1332_v30, %v1233_v34 }
 0x146   :  { %v247_v3 = vmul.f32 %v1594_v61, %v234_v2  ;;  %v1305_v2 = vld [vmem:[#allocation8 + $0xc4] sm:$0xf] }
 0x148   :  { %v1602_v4 = vsub.f32 %v228_v43, %v247_v3  ;;  %v1183_v43 = vld [vmem:[#allocation8 + $0x148] sm:$0xf]  ;;  %v1112_v3 = vor.u32 %v1309_v1, %v1111_v63  ;;  %v1339_v63 = vld [vmem:[#allocation8 + $0x1d4] sm:$0xf] }
 0x149   :  { %v1184_v46 = vor.u32 %v1326_v44, %v1183_v43  ;;  %v1060_v43 = vor.u32 %v1290_v40, %v1057_v41  ;;  %v1015_v44 = vld [vmem:[#allocation8] sm:$0xf] }
 0x14a   :  { %v255_v5 = vmul.f32 %v1602_v4, %v1602_v4  ;;  %v1016_v49 = vor.u32 %v1285_v45, %v1015_v44  ;;  %v1658_v44 = vld [vmem:[%s1739_s3] ss:$0 sm:$0xff] }
 0x14b   :  { %800 = vmatpush.bf16.msra.mxu3 %v1184_v46  ;;  %v1281_v46 = vld [vmem:[#allocation8 + $0x4] sm:$0xf] }
 0x14c   :  { %260 = vadd.xlane.f32.xlu2 %v255_v5  ;;  %v1113_v5 = vld [vmem:[#allocation8 + $0xe0] sm:$0xf0] }
 0x14d   :  { %v236_v6 = vpop.xlane.xlu1 %235 }
 0x14e   :  { %v248_v7 = vmul.f32 %v1594_v61, %v236_v6  ;;  %v1119_v6 = vld [vmem:[#allocation8 + $0xc8] sm:$0xf] }
 0x14f   :  { %801 = vmatpush.bf16.msra.mxu3 %v1152_v58  ;;  %v1028_v58 = vor.u32 %v1282_v55, %v1025_v56  ;;  %v1319_v55 = vld [vmem:[#allocation8 + $0x12c] sm:$0xf0] }
 0x150   :  { %v1607_v8 = vsub.f32 %v229_v50, %v248_v7  ;;  %v1143_v50 = vld [vmem:[#allocation8 + $0x100] sm:$0xf]  ;;  %v1310_v7 = vld [vmem:[#allocation8 + $0xe4] sm:$0xf0] }
 0x151   :  { %v1144_v53 = vor.u32 %v1317_v51, %v1143_v50  ;;  %v1017_v50 = vld [vmem:[#allocation8 + $0x20] sm:$0xf0]  ;;  %v1023_v51 = vld [vmem:[#allocation8 + $0x8] sm:$0xf] }
 0x152   :  { %v256_v9 = vmul.f32 %v1607_v8, %v1607_v8 }
 0x153   :  { %763 = vmatpush.bf16.msra.mxu1 %v1144_v53  ;;  %v1020_v53 = vor.u32 %v1281_v46, %v1017_v50  ;;  %v1324_v50 = vld [vmem:[#allocation8 + $0x15c] sm:$0xf] }
 0x154   :  { %262 = vadd.xlane.f32.xlu0 %v256_v9 }
 0x155   :  { %v238_v10 = vpop.xlane.xlu1 %237 }
 0x156   :  { %v249_v11 = vmul.f32 %v1594_v61, %v238_v10  ;;  %v1116_v10 = vor.u32 %v1305_v2, %v1113_v5  ;;  %v1257_v5 = vld [vmem:[#allocation8 + $0x1f0] sm:$0xf0] }
 0x157   :  { %764 = vmatpush.bf16.msra.mxu1 %v1112_v3  ;;  %v1256_v3 = vor.u32 %v1343_v62, %v1255_v60  ;;  %v1161_v60 = vld [vmem:[#allocation8 + $0x130] sm:$0xf0] }
 0x158   :  { %v1612_v12 = vsub.f32 %v230_v54, %v249_v11  ;;  %v1145_v54 = vld [vmem:[#allocation8 + $0x120] sm:$0xf0]  ;;  %v1120_v11 = vor.u32 %v1310_v7, %v1119_v6  ;;  %v1263_v6 = vld [vmem:[#allocation8 + $0x1d8] sm:$0xf] }
 0x159   :  { %v1148_v57 = vor.u32 %v1313_v52, %v1145_v54  ;;  %v1286_v54 = vld [vmem:[#allocation8 + $0x24] sm:$0xf0] }
 0x15a   :  { %v257_v13 = vmul.f32 %v1612_v12, %v1612_v12  ;;  %802 = vmatpush.bf16.msra.mxu3 %v1120_v11  ;;  %v1340_v11 = vld [vmem:[#allocation8 + $0x1dc] sm:$0xf] }
 0x15b   :  { %782 = vmatpush.bf16.msra.mxu2 %v1148_v57  ;;  %765 = vmatpush.bf16.msra.mxu1 %v1080_v21  ;;  %v1024_v57 = vor.u32 %v1286_v54, %v1023_v51  ;;  %v1335_v21 = vld [vmem:[#allocation8 + $0x1ac] sm:$0xf0]  ;;  %v1201_v51 = vld [vmem:[#allocation8 + $0x178] sm:$0xf0] }
 0x15c   :  { %264 = vadd.xlane.f32.xlu1 %v257_v13  ;;  %v1306_v13 = vld [vmem:[#allocation8 + $0xcc] sm:$0xf]  ;;  %v1159_v54 = vld [vmem:[#allocation8 + $0x110] sm:$0xf] }
 0x15d   :  { %v1124_v16 = vor.u32 %v1306_v13, %v1121_v14  ;;  %v1265_v13 = vld [vmem:[#allocation8 + $0x1f8] sm:$0xf0] }
 0x15e   :  { %803 = vmatpush.bf16.msra.mxu3 %v1088_v28  ;;  %v1228_v28 = vor.u32 %v1331_v25, %v1225_v26  ;;  %v1312_v26 = vld [vmem:[#allocation8 + $0xf4] sm:$0xf0] }
 0x15f   :  { %783 = vmatpush.bf16.msra.mxu2 %v1116_v10  ;;  %821 = vmatpush.bf16.msrb.mxu0 %v1124_v16  ;;  %v1344_v10 = vld [vmem:[#allocation8 + $0x1f4] sm:$0xf0]  ;;  %v1630_v16 = vor.u32 %v1340_v11, %v1265_v13 }
 0x160   :  { %766 = vmatpush.bf16.msra.mxu1 %v1048_v33 }
 0x162   :  { %804 = vmatpush.bf16.msra.mxu3 %v1056_v39 }
 0x163   :  { %784 = vmatpush.bf16.msra.mxu2 %v1084_v24  ;;  %822 = vmatpush.bf16.msrb.mxu0 %v1092_v29  ;;  %v1224_v24 = vor.u32 %v1335_v21, %v1223_v19  ;;  %v1336_v29 = vld [vmem:[#allocation8 + $0x1b4] sm:$0xf0]  ;;  %v1307_v19 = vld [vmem:[#allocation8 + $0xd4] sm:$0xf] }
 0x164   :  { %767 = vmatpush.bf16.msra.mxu1 %v1016_v49  ;;  %v1232_v33 = vor.u32 %v1336_v29, %v1231_v27  ;;  %v1328_v49 = vld [vmem:[#allocation8 + $0x174] sm:$0xf0]  ;;  %v1308_v27 = vld [vmem:[#allocation8 + $0xdc] sm:$0xf] }
 0x166   :  { %805 = vmatpush.bf16.msra.mxu3 %v1024_v57 }
 0x167   :  { %785 = vmatpush.bf16.msra.mxu2 %v1052_v38  ;;  %823 = vmatpush.bf16.msrb.mxu0 %v1060_v43  ;;  %v1199_v43 = vld [vmem:[#allocation8 + $0x158] sm:$0xf] }
 0x168   :  { %836 = vmatpush.bf16.msrb.mxu1 %v1256_v3  ;;  %v1320_v3 = vld [vmem:[#allocation8 + $0x134] sm:$0xf0] }
 0x16b   :  { %786 = vmatpush.bf16.msra.mxu2 %v1020_v53  ;;  %824 = vmatpush.bf16.msrb.mxu0 %v1028_v58  ;;  %v1663_v53 = vor.u32 %v1324_v50, %v1201_v51  ;;  %v1160_v58 = vor.u32 %v1319_v55, %v1159_v54 }
 0x16c   :  { %837 = vmatpush.bf16.msrb.mxu1 %v1224_v24  ;;  %v1135_v24 = vld [vmem:[#allocation8 + $0xd8] sm:$0xf] }
 0x16f   :  { %893 = vmatpush.bf16.msra.mxu0 %v1630_v16 }
 0x173   :  { %894 = vmatpush.bf16.msra.mxu0 %v1650_v35 }
 0x177   :  { %895 = vmatpush.bf16.msra.mxu0 %v1663_v53 }
 0x1b7   :  { %v259_v9 = vpop.xlane.xlu2 %258 }
 0x1b8   :  { %v266_v15 = vmul.f32 %v259_v9, %v1594_v61  ;;  %v1260_v9 = vor.u32 %v1339_v63, %v1257_v5  ;;  %v1316_v5 = vld [vmem:[#allocation8 + $0x11c] sm:$0xf] }
 0x1ba   :  { %v1617_v20 = vadd.f32 1e-10, %v266_v15  ;;  %v1264_v15 = vor.u32 %v1344_v10, %v1263_v6  ;;  %855 = vmatpush.bf16.msrb.mxu2 %v1260_v9  ;;  %v1169_v6 = vld [vmem:[#allocation8 + $0x138] sm:$0xf0] }
 0x1bb   :  { %v1685_v10 = vor.u32 %v1316_v5, %v1169_v6  ;;  %v1073_v5 = vld [vmem:[#allocation8 + $0x78] sm:$0xf0] }
 0x1bc   :  { %1388 = vrsqrt.f32 %v1617_v20  ;;  %874 = vmatpush.bf16.msrb.mxu3 %v1264_v15  ;;  %vm280_vm2 = vweird.f32 %v1617_v20  ;;  %v1311_v15 = vld [vmem:[#allocation8 + $0xec] sm:$0xf0] }
 0x1bd   :  { %896 = vmatpush.bf16.msra.mxu0 %v1685_v10 }
 0x1be   :  { %856 = vmatpush.bf16.msrb.mxu2 %v1228_v28  ;;  %v1137_v28 = vld [vmem:[#allocation8 + $0xf8] sm:$0xf0] }
 0x1bf   :  { %v261_v37 = vpop.xlane.xlu2 %260  ;;  %v1691_v30 = vor.u32 %v1308_v27, %v1137_v28 }
 0x1c0   :  { %v267_v42 = vmul.f32 %v261_v37, %v1594_v61  ;;  %v1323_v37 = vld [vmem:[#allocation8 + $0x154] sm:$0xf]  ;;  %875 = vmatpush.bf16.msrb.mxu3 %v1232_v33 }
 0x1c1   :  { %897 = vmatpush.bf16.msra.mxu0 %v1691_v30 }
 0x1c2   :  { %v1621_v47 = vpop.eup %1388  ;;  %v1623_v48 = vadd.f32 1e-10, %v267_v42  ;;  %v1193_v42 = vld [vmem:[#allocation8 + $0x170] sm:$0xf0] }
 0x1c3   :  { %v275_v52 = vmul.f32 %v1621_v47, %v1617_v20  ;;  %vm281_vm1 = vweird.f32 %v1621_v47  ;;  %v1191_v20 = vld [vmem:[#allocation8 + $0x150] sm:$0xf]  ;;  %v1196_v46 = vor.u32 %v1323_v37, %v1193_v42  ;;  %v1299_v37 = vld [vmem:[#allocation8 + $0x94] sm:$0xf] }
 0x1c4   :  { %1390 = vrsqrt.f32 %v1623_v48  ;;  %vm1645_vm3 = vmor %vm280_vm2, %vm281_vm1  ;;  %v1192_v41 = vor.u32 %v1327_v36, %v1191_v20  ;;  %vm290_vm5 = vweird.f32 %v1623_v48 }
 0x1c5   :  { %v276_v59 = vmul.f32 %v1621_v47, %v275_v52  ;;  %v1200_v52 = vor.u32 %v1328_v49, %v1199_v43  ;;  %857 = vmatpush.bf16.msrb.mxu2 %v1196_v46  ;;  %v1304_v43 = vld [vmem:[#allocation8 + $0xb4] sm:$0xf0]  ;;  %v1105_v46 = vld [vmem:[#allocation8 + $0xb8] sm:$0xf0] }
 0x1c6   :  { %838 = vmatpush.bf16.msrb.mxu1 %v1192_v41 }
 0x1c7   :  { %v277_v1 = vmul.f32 0.5, %v276_v59  ;;  %v263_v2 = vpop.xlane.xlu0 %262  ;;  %v1315_v59 = vld [vmem:[#allocation8 + $0x114] sm:$0xf]  ;;  %876 = vmatpush.bf16.msrb.mxu3 %v1200_v52  ;;  %v1295_v52 = vld [vmem:[#allocation8 + $0x6c] sm:$0xf0] }
 0x1c8   :  { %v268_v7 = vmul.f32 %v263_v2, %v1594_v61  ;;  %v1167_v2 = vld [vmem:[#allocation8 + $0x118] sm:$0xf] }
 0x1c9   :  { %v278_v14 = vsub.f32 1.5, %v277_v1  ;;  %v1164_v1 = vor.u32 %v1315_v59, %v1161_v60  ;;  %v1071_v59 = vld [vmem:[#allocation8 + $0x58] sm:$0xf] }
 0x1ca   :  { %v1632_v17 = vpop.eup %1390  ;;  %v1635_v18 = vadd.f32 1e-10, %v268_v7  ;;  %839 = vmatpush.bf16.msrb.mxu1 %v1160_v58  ;;  %v1065_v58 = vld [vmem:[#allocation8 + $0x70] sm:$0xf0] }
 0x1cb   :  { %v279_v22 = vmul.f32 %v1621_v47, %v278_v14  ;;  %v285_v23 = vmul.f32 %v1632_v17, %v1623_v48  ;;  %vm291_vm4 = vweird.f32 %v1632_v17  ;;  %v1681_v48 = vld [vmem:[%s1740_s4] ss:$0 sm:$0xff]  ;;  %858 = vmatpush.bf16.msrb.mxu2 %v1164_v1  ;;  %v1127_v14 = vld [vmem:[#allocation8 + $0xd0] sm:$0xf]  ;;  %v1292_v1 = vld [vmem:[#allocation8 + $0x5c] sm:$0xf] }
 0x1cc   :  { %1392 = vrsqrt.f32 %v1635_v18  ;;  %vm292_vm6 = vmor %vm290_vm5, %vm291_vm4  ;;  %vm300_vm8 = vweird.f32 %v1635_v18  ;;  %v1076_v6 = vor.u32 %v1292_v1, %v1073_v5  ;;  %s1533_s4 = smov [#allocation11]  }
 0x1cd   :  { %v286_v32 = vmul.f32 %v1632_v17, %v285_v23  ;;  %v283_v38 = vsel %vm1645_vm3, %v1621_v47, %v279_v22  ;;  %v1128_v22 = vor.u32 %v1311_v15, %v1127_v14  ;;  %v1129_v23 = vld [vmem:[#allocation8 + $0xf0] sm:$0xf0]  ;;  %v1039_v15 = vld [vmem:[#allocation8 + $0x18] sm:$0xf]  ;;  %s948_s25 = sshll.u32 %s1533_s4, 4  ;;  %s949_s25 = int_to_ptr.vmem [resolvable:$true] %s948_s25 }
 0x1ce   :  { %v314_v57 = vmul.f32 %v283_v38, %v1597_v0  ;;  %v1168_v0 = vor.u32 %v1320_v3, %v1167_v2  ;;  %v1132_v25 = vor.u32 %v1307_v19, %v1129_v23  ;;  %v1097_v38 = vld [vmem:[#allocation8 + $0xb0] sm:$0xf0]  ;;  %v1041_v23 = vld [vmem:[#allocation8 + $0x38] sm:$0xf0] }
 0x1cf   :  { %v287_v39 = vmul.f32 0.5, %v286_v32  ;;  %v265_v40 = vpop.xlane.xlu1 %264  ;;  %840 = vmatpush.bf16.msrb.mxu1 %v1128_v22  ;;  %v1303_v32 = vld [vmem:[#allocation8 + $0xac] sm:$0xf0]  ;;  %v1100_v42 = vor.u32 %v1299_v37, %v1097_v38  ;;  %v1284_v22 = vld [vmem:[#allocation8 + $0x1c] sm:$0xf] }
 0x1d0   :  { %v269_v45 = vmul.f32 %v265_v40, %v1594_v61  ;;  %v322_v11 = vmul.f32 %v1658_v44, %v314_v57  ;;  %877 = vmatpush.bf16.msrb.mxu3 %v1168_v0  ;;  %859 = vmatpush.bf16.msrb.mxu2 %v1132_v25  ;;  %v1096_v36 = vor.u32 %v1303_v32, %v1095_v31  ;;  %v1291_v57 = vld [vmem:[#allocation8 + $0x54] sm:$0xf]  ;;  %v1031_v0 = vld [vmem:[#allocation8 + $0x10] sm:$0xf] }
 0x1d1   :  { %v288_v47 = vsub.f32 1.5, %v287_v39  ;;  %v1103_v39 = vld [vmem:[#allocation8 + $0x98] sm:$0xf]  ;;  %v1044_v27 = vor.u32 %v1284_v22, %v1041_v23 }
 0x1d2   :  { %v1665_v56 = vpop.eup %1392  ;;  %v1668_v61 = vadd.f32 1e-10, %v269_v45  ;;  %v330_v34 = vadd.f32 %v1681_v48, %v322_v11  ;;  %v1300_v45 = vld [vmem:[#allocation8 + $0x9c] sm:$0xf]  ;;  %v1104_v50 = vor.u32 %v1304_v43, %v1103_v39  ;;  %v1033_v11 = vld [vmem:[#allocation8 + $0x30] sm:$0xf0] }
 0x1d3   :  { %v289_v62 = vmul.f32 %v1632_v17, %v288_v47  ;;  %v295_v63 = vmul.f32 %v1665_v56, %v1635_v18  ;;  %vm301_vm7 = vweird.f32 %v1665_v56  ;;  %v1702_v51 = vor.u32 %v1300_v45, %v1105_v46  ;;  %v1063_v47 = vld [vmem:[#allocation8 + $0x50] sm:$0xf]  ;;  %841 = vmatpush.bf16.msrb.mxu1 %v1096_v36 }
 0x1d4   :  { %1394 = vrsqrt.f32 %v1668_v61  ;;  %v1064_v55 = vor.u32 %v1295_v52, %v1063_v47  ;;  %vm1708_vm9 = vmor %vm300_vm8, %vm301_vm7  ;;  %860 = vmatpush.bf16.msrb.mxu2 %v1100_v42  ;;  %vm310_vm11 = vweird.f32 %v1668_v61 }
 0x1d5   :  { %v293_v7 = vsel %vm292_vm6, %v1632_v17, %v289_v62  ;;  %v296_v9 = vmul.f32 %v1665_v56, %v295_v63  ;;  %v1068_v62 = vor.u32 %v1291_v57, %v1065_v58  ;;  %v1296_v63 = vld [vmem:[#allocation8 + $0x74] sm:$0xf0]  ;;  %898 = vmatpush.bf16.msra.mxu0 %v1702_v51 }
 0x1d6   :  { %v315_v13 = vmul.f32 %v293_v7, %v1602_v4  ;;  %v1136_v4 = vor.u32 %v1312_v26, %v1135_v24  ;;  %v1072_v3 = vor.u32 %v1296_v63, %v1071_v59  ;;  %v1287_v7 = vld [vmem:[#allocation8 + $0x2c] sm:$0xf0] }
 0x1d7   :  { %v297_v21 = vmul.f32 0.5, %v296_v9  ;;  %v1283_v9 = vld [vmem:[#allocation8 + $0x14] sm:$0xf]  ;;  %842 = vmatpush.bf16.msrb.mxu1 %v1064_v55  ;;  %v1032_v14 = vor.u32 %v1287_v7, %v1031_v0 }
 0x1d8   :  { %v323_v17 = vmul.f32 %v1658_v44, %v315_v13  ;;  %878 = vmatpush.bf16.msrb.mxu3 %v1136_v4  ;;  %861 = vmatpush.bf16.msrb.mxu2 %v1068_v62 }
 0x1d9   :  { %v298_v29 = vsub.f32 1.5, %v297_v21  ;;  %v1288_v21 = vld [vmem:[#allocation8 + $0x34] sm:$0xf0]  ;;  %899 = vmatpush.bf16.msra.mxu0 %v1076_v6 }
 0x1da   :  { %v1693_v33 = vpop.eup %1394  ;;  %v331_v20 = vadd.f32 %v1681_v48, %v323_v17  ;;  %v1040_v26 = vor.u32 %v1288_v21, %v1039_v15 }
 0x1db   :  { %v299_v40 = vmul.f32 %v1665_v56, %v298_v29  ;;  %v305_v41 = vmul.f32 %v1693_v33, %v1668_v61  ;;  %vm311_vm10 = vweird.f32 %v1693_v33  ;;  %843 = vmatpush.bf16.msrb.mxu1 %v1032_v14 }
 0x1dc   :  { %v1348_v49 = vpack.c.bf16 %v331_v20, %v330_v34  ;;  %879 = vmatpush.bf16.msrb.mxu3 %v1104_v50  ;;  %vm312_vm12 = vmor %vm310_vm11, %vm311_vm10 }
 0x1dd   :  { %v306_v54 = vmul.f32 %v1693_v33, %v305_v41  ;;  %v303_v18 = vsel %vm1708_vm9, %v1665_v56, %v299_v40  ;;  %v1036_v56 = vor.u32 %v1283_v9, %v1033_v11  ;;  %900 = vmatpush.bf16.msra.mxu0 %v1044_v27 }
 0x1de   :  { %1349 = vst [vmem:[#allocation2] sm:$0xff] %v1348_v49   ;;  %v316_v19 = vmul.f32 %v303_v18, %v1607_v8 }
 0x1df   :  { %v307_v2 = vmul.f32 0.5, %v306_v54  ;;  %862 = vmatpush.bf16.msrb.mxu2 %v1036_v56 }
 0x1e0   :  { %880 = vmatpush.bf16.msrb.mxu3 %v1072_v3  ;;  %v324_v8 = vmul.f32 %v1658_v44, %v316_v19 }
 0x1e1   :  { %v308_v13 = vsub.f32 1.5, %v307_v2 }
 0x1e2   :  { %v332_v61 = vadd.f32 %v1681_v48, %v324_v8 }
 0x1e3   :  { %v309_v24 = vmul.f32 %v1693_v33, %v308_v13 }
 0x1e4   :  { %881 = vmatpush.bf16.msrb.mxu3 %v1040_v26 }
 0x1e5   :  { %v313_v17 = vsel %vm312_vm12, %v1693_v33, %v309_v24  ;;  %v1279_v25 = vld [vmem:[#allocation2] sm:$0xff] }
 0x1e6   :  { %v317_v28 = vmul.f32 %v313_v17, %v1612_v12  ;;  %768 = vmatmul.bf16.vlgmr.msra.gmra.mxu1 %v1279_v25  ;;  %787 = vmatmul.bf16.vlgmr.msra.gmra.mxu2 %v1279_v25 }
 0x1e7   :  { %806 = vmatmul.bf16.vlgmr.msra.gmra.mxu3 %v1279_v25  ;;  %825 = vmatmul.bf16.vlgmr.msrb.gmra.mxu0 %v1279_v25 }
 0x1e8   :  { %v325_v29 = vmul.f32 %v1658_v44, %v317_v28  ;;  %1356 = vmatpush.bf16.msra.mxu1 %v1630_v16  ;;  %v410_v16 = vld [vmem:[#allocation9] sm:$0xff] }
 0x1e9   :  { %v415_v44 = vperm.slane %v410_v16, 3  ;;  %v414_v33 = vperm.slane %v410_v16, 2  ;;  %v416_v63 = vperm.slane %v410_v16, 4  ;;  %v419_v18 = vperm.slane %v410_v16, 7 }
 0x1ea   :  { %v333_v4 = vadd.f32 %v1681_v48, %v325_v29  ;;  %v417_v11 = vperm.slane %v410_v16, 5  ;;  %v418_v13 = vperm.slane %v410_v16, 6 }
 0x1ec   :  { %v1353_v31 = vpack.c.bf16 %v333_v4, %v332_v61  ;;  %1357 = vmatpush.bf16.msra.mxu1 %v1650_v35  ;;  %v412_v35 = vperm.slane %v410_v16, 0 }
 0x1ee   :  { %1355 = vst [vmem:[#allocation2 + $0x8] sm:$0xff] %v1353_v31  }
 0x1f0   :  { %1358 = vmatpush.bf16.msra.mxu1 %v1663_v53 }
 0x1f4   :  { %1359 = vmatpush.bf16.msra.mxu1 %v1685_v10 }
 0x1f5   :  { %v1280_v12 = vld [vmem:[#allocation2 + $0x8] sm:$0xff] }
 0x1f6   :  { %773 = vmatmul.bf16.gmra.mxu1 %v1280_v12  ;;  %792 = vmatmul.bf16.gmra.mxu2 %v1280_v12 }
 0x1f7   :  { %811 = vmatmul.bf16.gmra.mxu3 %v1280_v12  ;;  %830 = vmatmul.bf16.gmra.mxu0 %v1280_v12 }
 0x1f8   :  { %1360 = vmatpush.bf16.msra.mxu1 %v1691_v30  ;;  %v413_v30 = vperm.slane %v410_v16, 1 }
 0x1fc   :  { %1361 = vmatpush.bf16.msra.mxu1 %v1702_v51 }
 0x200   :  { %1362 = vmatpush.bf16.msra.mxu1 %v1076_v6 }
 0x204   :  { %1363 = vmatpush.bf16.msra.mxu1 %v1044_v27 }
 0x206   :  { %844 = vmatmul.bf16.vlgmr.msrb.gmra.mxu1 %v1279_v25  ;;  %863 = vmatmul.bf16.vlgmr.msrb.gmra.mxu2 %v1279_v25 }
 0x207   :  { %882 = vmatmul.bf16.vlgmr.msrb.gmra.mxu3 %v1279_v25  ;;  %901 = vmatmul.bf16.vlgmr.msra.gmra.mxu0 %v1279_v25 }
 0x216   :  { %849 = vmatmul.bf16.gmra.mxu1 %v1280_v12  ;;  %868 = vmatmul.bf16.gmra.mxu2 %v1280_v12 }
 0x217   :  { %887 = vmatmul.bf16.gmra.mxu3 %v1280_v12 }
 0x226   :  { %906 = vmatmul.bf16.vlgmr.msra.gmra.mxu1 %v1280_v12 }
 0x263   :  { %v769_v53 = vpop.f32.mrf.mxu1 }
 0x264   :  { %v770_v48 = vadd.f32 %v769_v53, %v412_v35  ;;  %v826_v10 = vpop.f32.mrf.mxu0 }
 0x265   :  { %v827_v32 = vadd.f32 %v826_v10, %v415_v44 }
 0x266   :  { %912 = vst [vmem:[#allocation11] sm:$0xff] %v770_v48 }
 0x267   :  { %915 = vst [vmem:[#allocation11 + $0x18] sm:$0xff] %v827_v32 }
 0x269   :  { %v788_v34 = vpop.f32.mrf.mxu2 }
 0x26a   :  { %v789_v20 = vadd.f32 %v788_v34, %v413_v30  ;;  %v807_v36 = vpop.f32.mrf.mxu3 }
 0x26b   :  { %v808_v37 = vadd.f32 %v807_v36, %v414_v33  ;;  %v771_v38 = vpop.f32.mrf.mxu1 }
 0x26c   :  { %913 = vst [vmem:[#allocation11 + $0x8] sm:$0xff] %v789_v20  ;;  %v772_v39 = vadd.f32 %v771_v38, %v412_v35  ;;  %v828_v40 = vpop.f32.mrf.mxu0 }
 0x26d   :  { %914 = vst [vmem:[#allocation11 + $0x10] sm:$0xff] %v808_v37  ;;  %v829_v41 = vadd.f32 %v828_v40, %v415_v44 }
 0x26e   :  { %920 = vst [vmem:[#allocation11 + $0x40] sm:$0xff] %v772_v39 }
 0x26f   :  { %923 = vst [vmem:[#allocation11 + $0x58] sm:$0xff] %v829_v41 }
 0x271   :  { %v790_v42 = vpop.f32.mrf.mxu2 }
 0x272   :  { %v791_v43 = vadd.f32 %v790_v42, %v413_v30  ;;  %v809_v45 = vpop.f32.mrf.mxu3 }
 0x273   :  { %v810_v46 = vadd.f32 %v809_v45, %v414_v33  ;;  %v774_v49 = vpop.f32.mrf.mxu1 }
 0x274   :  { %921 = vst [vmem:[#allocation11 + $0x48] sm:$0xff] %v791_v43  ;;  %v775_v50 = vadd.f32 %v774_v49, %v412_v35  ;;  %v831_v51 = vpop.f32.mrf.mxu0 }
 0x275   :  { %922 = vst [vmem:[#allocation11 + $0x50] sm:$0xff] %v810_v46  ;;  %v832_v47 = vadd.f32 %v831_v51, %v415_v44 }
 0x276   :  { %928 = vst [vmem:[#allocation11 + $0x80] sm:$0xff] %v775_v50 }
 0x277   :  { %931 = vst [vmem:[#allocation11 + $0x98] sm:$0xff] %v832_v47 }
 0x279   :  { %v793_v52 = vpop.f32.mrf.mxu2 }
 0x27a   :  { %v794_v54 = vadd.f32 %v793_v52, %v413_v30  ;;  %v812_v55 = vpop.f32.mrf.mxu3 }
 0x27b   :  { %v813_v57 = vadd.f32 %v812_v55, %v414_v33  ;;  %v776_v58 = vpop.f32.mrf.mxu1 }
 0x27c   :  { %929 = vst [vmem:[#allocation11 + $0x88] sm:$0xff] %v794_v54  ;;  %v777_v59 = vadd.f32 %v776_v58, %v412_v35  ;;  %v833_v60 = vpop.f32.mrf.mxu0 }
 0x27d   :  { %930 = vst [vmem:[#allocation11 + $0x90] sm:$0xff] %v813_v57  ;;  %v834_v62 = vadd.f32 %v833_v60, %v415_v44 }
 0x27e   :  { %936 = vst [vmem:[#allocation11 + $0xc0] sm:$0xff] %v777_v59 }
 0x27f   :  { %939 = vst [vmem:[#allocation11 + $0xd8] sm:$0xff] %v834_v62 }
 0x281   :  { %v795_v1 = vpop.f32.mrf.mxu2 }
 0x282   :  { %v796_v2 = vadd.f32 %v795_v1, %v413_v30  ;;  %v814_v3 = vpop.f32.mrf.mxu3 }
 0x283   :  { %v815_v5 = vadd.f32 %v814_v3, %v414_v33  ;;  %v845_v0 = vpop.f32.mrf.mxu1 }
 0x284   :  { %937 = vst [vmem:[#allocation11 + $0xc8] sm:$0xff] %v796_v2  ;;  %v846_v6 = vadd.f32 %v845_v0, %v416_v63  ;;  %v902_v7 = vpop.f32.mrf.mxu0 }
 0x285   :  { %938 = vst [vmem:[#allocation11 + $0xd0] sm:$0xff] %v815_v5  ;;  %v903_v9 = vadd.f32 %v902_v7, %v419_v18 }
 0x286   :  { %916 = vst [vmem:[#allocation11 + $0x20] sm:$0xff] %v846_v6 }
 0x287   :  { %919 = vst [vmem:[#allocation11 + $0x38] sm:$0xff] %v903_v9 }
 0x289   :  { %v864_v14 = vpop.f32.mrf.mxu2 }
 0x28a   :  { %v865_v15 = vadd.f32 %v864_v14, %v417_v11  ;;  %v883_v19 = vpop.f32.mrf.mxu3 }
 0x28b   :  { %v884_v56 = vadd.f32 %v883_v19, %v418_v13  ;;  %v847_v21 = vpop.f32.mrf.mxu1 }
 0x28c   :  { %917 = vst [vmem:[#allocation11 + $0x28] sm:$0xff] %v865_v15  ;;  %v848_v22 = vadd.f32 %v847_v21, %v416_v63  ;;  %v904_v23 = vpop.f32.mrf.mxu0 }
 0x28d   :  { %918 = vst [vmem:[#allocation11 + $0x30] sm:$0xff] %v884_v56  ;;  %v905_v24 = vadd.f32 %v904_v23, %v419_v18 }
 0x28e   :  { %924 = vst [vmem:[#allocation11 + $0x60] sm:$0xff] %v848_v22 }
 0x28f   :  { %927 = vst [vmem:[#allocation11 + $0x78] sm:$0xff] %v905_v24 }
 0x291   :  { %v866_v17 = vpop.f32.mrf.mxu2 }
 0x292   :  { %v867_v25 = vadd.f32 %v866_v17, %v417_v11  ;;  %v885_v26 = vpop.f32.mrf.mxu3 }
 0x293   :  { %v886_v27 = vadd.f32 %v885_v26, %v418_v13  ;;  %v850_v8 = vpop.f32.mrf.mxu1 }
 0x294   :  { %925 = vst [vmem:[#allocation11 + $0x68] sm:$0xff] %v867_v25  ;;  %v851_v28 = vadd.f32 %v850_v8, %v416_v63 }
 0x295   :  { %926 = vst [vmem:[#allocation11 + $0x70] sm:$0xff] %v886_v27 }
 0x296   :  { %932 = vst [vmem:[#allocation11 + $0xa0] sm:$0xff] %v851_v28 }
 0x299   :  { %v869_v29 = vpop.f32.mrf.mxu2 }
 0x29a   :  { %v870_v61 = vadd.f32 %v869_v29, %v417_v11  ;;  %v888_v4 = vpop.f32.mrf.mxu3 }
 0x29b   :  { %v889_v31 = vadd.f32 %v888_v4, %v418_v13  ;;  %v852_v12 = vpop.f32.mrf.mxu1 }
 0x29c   :  { %933 = vst [vmem:[#allocation11 + $0xa8] sm:$0xff] %v870_v61  ;;  %v853_v16 = vadd.f32 %v852_v12, %v416_v63 }
 0x29d   :  { %934 = vst [vmem:[#allocation11 + $0xb0] sm:$0xff] %v889_v31 }
 0x29e   :  { %940 = vst [vmem:[#allocation11 + $0xe0] sm:$0xff] %v853_v16 }
 0x2a1   :  { %v871_v35 = vpop.f32.mrf.mxu2 }
 0x2a2   :  { %v872_v44 = vadd.f32 %v871_v35, %v417_v11  ;;  %v890_v53 = vpop.f32.mrf.mxu3 }
 0x2a3   :  { %v891_v48 = vadd.f32 %v890_v53, %v418_v13  ;;  %v907_v10 = vpop.f32.mrf.mxu1 }
 0x2a4   :  { %941 = vst [vmem:[#allocation11 + $0xe8] sm:$0xff] %v872_v44  ;;  %v908_v32 = vadd.f32 %v907_v10, %v419_v18 }
 0x2a5   :  { %942 = vst [vmem:[#allocation11 + $0xf0] sm:$0xff] %v891_v48 }
 0x2a6   :  { %935 = vst [vmem:[#allocation11 + $0xb8] sm:$0xff] %v908_v32 }
 0x2ab   :  { %v909_v30 = vpop.f32.mrf.mxu1 }
 0x2ac   :  { %v910_v33 = vadd.f32 %v909_v30, %v419_v18 }
 0x2ae   :  { %943 = vst [vmem:[#allocation11 + $0xf8] sm:$0xff] %v910_v33 }
 0x2af   :  { %956 = dma.vmem_to_hbm [thread:$0]  %s949_s25, 4096, %s951_s28, [#allocation5], %s1534_s29, %s1534_s29, %s1525_s9  }
 0x2b0   :  { %1522 = dma.done.wait [#allocation5], 4096  }
 0x2b1   :  { %1523 = vsyncadd [#allocation5], 4294963200 }
 0x2b2   :  { %961 = vsyncpa [#allocation4], 1 }
 0x2b3   :  { %962 = vsyncpa [#allocation7], 1 }
 0x2b4   :  { %963 = vsyncpa [#allocation10], 1 }
 0x2b5   :  { %964 = vsyncpa [#allocation5], 1 }

// kernel: tpu_custom_call.1
= control target key start
LH: loop header
LB: loop body
LE: loop exit
PB: predicated region body
PF: predicated region fallthrough
CT: control target
= control target key end

     0   :  { %12 = vsyncpa [#allocation4], 0  ;;  %s1736_s0 = inlined_call_operand.hbm [shape: bf16[32,128], index: 0, kind: input, shape index: {}]   ;;  %s1737_s1 = inlined_call_operand.hbm [shape: bf16[128,128], index: 1, kind: input, shape index: {}]   ;;  %s1738_s2 = inlined_call_operand.vmem [shape: f32[1,128], index: 2, kind: input, shape index: {}]   ;;  %s1739_s3 = inlined_call_operand.vmem [shape: f32[1,128], index: 3, kind: input, shape index: {}]   ;;  %s1740_s4 = inlined_call_operand.vmem [shape: f32[1,128], index: 4, kind: input, shape index: {}]   ;;  %s1741_s5 = inlined_call_operand.hbm [shape: bf16[128,1024], index: 5, kind: input, shape index: {}]   ;;  %s1742_s6 = inlined_call_operand.hbm [shape: f32[1,1024], index: 6, kind: input, shape index: {}]   ;;  %s1743_s7 = inlined_call_operand.hbm [shape: f32[32,1024], index: 7, kind: output, shape index: {}]  }
   0x1   :  { %13 = vsyncpa [#allocation7], 0 }
   0x2   :  { %14 = vsyncpa [#allocation10], 0 }
   0x3   :  { %15 = vsyncpa [#allocation5], 0  ;;  %s33_s26 = sshll.u32 %s1737_s1, 4  ;;  %s1524_s27 = smov [#allocation6]   ;;  %s34_s26 = int_to_ptr.hbm [resolvable:$true] %s33_s26 }
   0x4   :  { %s35_s28 = sshll.u32 %s1524_s27, 4  ;;  %s20_s8 = sshll.u32 %s1736_s0, 4  ;;  %s36_s28 = int_to_ptr.vmem [resolvable:$true] %s35_s28  ;;  %s21_s8 = int_to_ptr.hbm [resolvable:$true] %s20_s8 }
   0x5   :  { %s1525_s9 = smov 64   ;;  %s1526_s10 = smov 4  }
   0x6   :  { %41 = dma.hbm_to_vmem [thread:$0]  %s34_s26, 1024, %s36_s28, [#allocation7], %s1525_s9, %s1525_s9, %s1526_s10  }
   0x7   :  { %s1527_s11 = smov [#allocation3]   ;;  %s52_s1 = sshll.u32 %s1741_s5, 4  ;;  %s53_s1 = int_to_ptr.hbm [resolvable:$true] %s52_s1 }
   0x8   :  { %s22_s12 = sshll.u32 %s1527_s11, 4  ;;  %s1528_s15 = smov [#allocation8]   ;;  %s23_s12 = int_to_ptr.vmem [resolvable:$true] %s22_s12 }
   0x9   :  { %28 = dma.hbm_to_vmem [thread:$0]  %s21_s8, 256, %s23_s12, [#allocation4], %s1525_s9, %s1525_s9, %s1526_s10  }
   0xa   :  { %s54_s16 = sshll.u32 %s1528_s15, 4  ;;  %s66_s18 = sshll.u32 %s1742_s6, 4  ;;  %s55_s16 = int_to_ptr.vmem [resolvable:$true] %s54_s16  ;;  %s67_s18 = int_to_ptr.hbm [resolvable:$true] %s66_s18 }
   0xb   :  { %s1529_s19 = smov 512   ;;  %s1530_s20 = smov 32  }
   0xc   :  { %60 = dma.hbm_to_vmem [thread:$0]  %s53_s1, 8192, %s55_s16, [#allocation7], %s1529_s19, %s1529_s19, %s1530_s20  }
   0xd   :  { %s1531_s21 = smov [#allocation9]  }
   0xe   :  { %s68_s22 = sshll.u32 %s1531_s21, 4  ;;  %s69_s22 = int_to_ptr.vmem [resolvable:$true] %s68_s22 }
   0xf   :  { %71 = dma.hbm_to_vmem [thread:$0]  %s67_s18, 128, %s69_s22, [#allocation10]  }
  0x10   :  { %1516 = dma.done.wait [#allocation4], 256  }
  0x11   :  { %1517 = vsyncadd [#allocation4], 4294967040 }
  0x12   :  { %1518 = dma.done.wait [#allocation7], 9216  }
  0x13   :  { %1519 = vsyncadd [#allocation7], 4294958080 }
  0x14   :  { %1520 = dma.done.wait [#allocation10], 128  }
  0x15   :  { %1521 = vsyncadd [#allocation10], 4294967168  ;;  %v1278_v0 = vld [vmem:[#allocation6 + $0x38] sm:$0xff]  ;;  %v1277_v1 = vld [vmem:[#allocation6 + $0x30] sm:$0xff]  ;;  %v1532_v55 = vmov 128.0   ;;  %s950_s28 = sshll.u32 %s1743_s7, 4  ;;  %s951_s28 = int_to_ptr.hbm [resolvable:$true] %s950_s28 }
  0x16   :  { %176 = vmatpush.bf16.msra.mxu0 %v1278_v0  ;;  %v1276_v2 = vld [vmem:[#allocation6 + $0x28] sm:$0xff]  ;;  %v1275_v3 = vld [vmem:[#allocation6 + $0x20] sm:$0xff]  ;;  %v1274_v4 = vld [vmem:[#allocation6 + $0x18] sm:$0xff]  ;;  %s1534_s29 = smov 1024  }
  0x17   :  { %v1273_v5 = vld [vmem:[#allocation6 + $0x10] sm:$0xff]  ;;  %v1272_v6 = vld [vmem:[#allocation6 + $0x8] sm:$0xff]  ;;  %v1271_v7 = vld [vmem:[#allocation6] sm:$0xff] }
  0x18   :  { %v1269_v8 = vld [vmem:[#allocation3] sm:$0xff]  ;;  %v1270_v9 = vld [vmem:[#allocation3 + $0x8] sm:$0xff]  ;;  %v1375_v10 = vld [vmem:[%s1738_s2] ss:$0 sm:$0xff] }
  0x1a   :  { %177 = vmatpush.bf16.msra.mxu0 %v1277_v1 }
  0x1e   :  { %178 = vmatpush.bf16.msra.mxu0 %v1276_v2 }
  0x22   :  { %179 = vmatpush.bf16.msra.mxu0 %v1275_v3 }
  0x26   :  { %180 = vmatpush.bf16.msra.mxu0 %v1274_v4 }
  0x2a   :  { %181 = vmatpush.bf16.msra.mxu0 %v1273_v5 }
  0x2e   :  { %182 = vmatpush.bf16.msra.mxu0 %v1272_v6 }
  0x32   :  { %183 = vmatpush.bf16.msra.mxu0 %v1271_v7 }
  0x35   :  { %184 = vmatmul.bf16.vlgmr.msra.gmra.mxu0 %v1269_v8 }
  0x45   :  { %189 = vmatmul.bf16.gmra.mxu0 %v1270_v9 }
  0xb2   :  { %v185_v11 = vpop.f32.mrf.mxu0 }
  0xb3   :  { %v186_v12 = vadd.f32 %v1375_v10, %v185_v11 }
  0xb5   :  { %v199_v13 = vmul.f32 0.044715, %v186_v12  ;;  %v195_v29 = vmul.f32 0.5, %v186_v12 }
  0xb7   :  { %v203_v14 = vmul.f32 %v199_v13, %v186_v12 }
  0xb9   :  { %v207_v15 = vmul.f32 %v203_v14, %v186_v12  ;;  %v1239_v14 = vld [vmem:[#allocation8 + $0x1c0] sm:$0xf] }
  0xba   :  { %v187_v16 = vpop.f32.mrf.mxu0 }
  0xbb   :  { %v188_v17 = vadd.f32 %v1375_v10, %v187_v16  ;;  %v211_v18 = vadd.f32 %v207_v15, %v186_v12  ;;  %v1341_v15 = vld [vmem:[#allocation8 + $0x1dc] sm:$0xf0]  ;;  %v1337_v16 = vld [vmem:[#allocation8 + $0x1c4] sm:$0xf] }
  0xbd   :  { %v215_v19 = vmul.f32 0.7978846, %v211_v18  ;;  %v200_v20 = vmul.f32 0.044715, %v188_v17  ;;  %v196_v40 = vmul.f32 0.5, %v188_v17 }
  0xbe   :  { %v1241_v18 = vld [vmem:[#allocation8 + $0x1e0] sm:$0xf0] }
  0xbf   :  { %1378 = vtanh.f32 %v215_v19  ;;  %v204_v21 = vmul.f32 %v200_v20, %v188_v17  ;;  %v1247_v19 = vld [vmem:[#allocation8 + $0x1c8] sm:$0xf] }
  0xc0   :  { %v1342_v20 = vld [vmem:[#allocation8 + $0x1e4] sm:$0xf0] }
  0xc1   :  { %v208_v22 = vmul.f32 %v204_v21, %v188_v17  ;;  %v1244_v21 = vor.u32 %v1337_v16, %v1241_v18  ;;  %v1301_v18 = vld [vmem:[#allocation8 + $0x9c] sm:$0xf0] }
  0xc2   :  { %v190_v23 = vpop.f32.mrf.mxu0 }
  0xc3   :  { %v191_v24 = vadd.f32 %v1375_v10, %v190_v23  ;;  %v212_v25 = vadd.f32 %v208_v22, %v188_v17  ;;  %v1240_v17 = vor.u32 %v1341_v15, %v1239_v14  ;;  %v1248_v22 = vor.u32 %v1342_v20, %v1247_v19  ;;  %v1338_v23 = vld [vmem:[#allocation8 + $0x1cc] sm:$0xf]  ;;  %779 = vmatpush.bf16.msra.mxu2 %v1244_v21  ;;  %v1297_v19 = vld [vmem:[#allocation8 + $0x84] sm:$0xf] }
  0xc4   :  { %v1121_v14 = vld [vmem:[#allocation8 + $0xe8] sm:$0xf0] }
  0xc5   :  { %v1379_v26 = vpop.eup %1378  ;;  %v216_v27 = vmul.f32 0.7978846, %v212_v25  ;;  %v201_v28 = vmul.f32 0.044715, %v191_v24  ;;  %v197_v48 = vmul.f32 0.5, %v191_v24  ;;  %760 = vmatpush.bf16.msra.mxu1 %v1240_v17  ;;  %798 = vmatpush.bf16.msra.mxu3 %v1248_v22 }
  0xc6   :  { %v223_v30 = vadd.f32 1.0, %v1379_v26  ;;  %v1207_v26 = vld [vmem:[#allocation8 + $0x180] sm:$0xf]  ;;  %v1081_v22 = vld [vmem:[#allocation8 + $0xa0] sm:$0xf0] }
  0xc7   :  { %1380 = vtanh.f32 %v216_v27  ;;  %v205_v31 = vmul.f32 %v201_v28, %v191_v24  ;;  %v1333_v27 = vld [vmem:[#allocation8 + $0x19c] sm:$0xf0]  ;;  %v1329_v28 = vld [vmem:[#allocation8 + $0x184] sm:$0xf] }
  0xc8   :  { %v227_v32 = vmul.f32 %v223_v30, %v195_v29  ;;  %v1208_v29 = vor.u32 %v1333_v27, %v1207_v26  ;;  %v1209_v30 = vld [vmem:[#allocation8 + $0x1a0] sm:$0xf0]  ;;  %v1079_v17 = vld [vmem:[#allocation8 + $0x80] sm:$0xf]  ;;  %v1298_v26 = vld [vmem:[#allocation8 + $0x8c] sm:$0xf] }
  0xc9   :  { %v209_v33 = vmul.f32 %v205_v31, %v191_v24  ;;  %v1215_v31 = vld [vmem:[#allocation8 + $0x188] sm:$0xf]  ;;  %v1080_v21 = vor.u32 %v1301_v18, %v1079_v17  ;;  %v1089_v27 = vld [vmem:[#allocation8 + $0xa8] sm:$0xf0] }
  0xca   :  { %v192_v34 = vpop.f32.mrf.mxu0  ;;  %231 = vadd.xlane.f32.xlu0 %v227_v32  ;;  %761 = vmatpush.bf16.msra.mxu1 %v1208_v29  ;;  %v1092_v29 = vor.u32 %v1298_v26, %v1089_v27  ;;  %v1225_v26 = vld [vmem:[#allocation8 + $0x1b0] sm:$0xf0]  ;;  %v1231_v27 = vld [vmem:[#allocation8 + $0x198] sm:$0xf] }
  0xcb   :  { %v193_v35 = vadd.f32 %v1375_v10, %v192_v34  ;;  %v213_v36 = vadd.f32 %v209_v33, %v191_v24  ;;  %v1249_v24 = vld [vmem:[#allocation8 + $0x1e8] sm:$0xf0]  ;;  %v1212_v33 = vor.u32 %v1329_v28, %v1209_v30  ;;  %v1047_v30 = vld [vmem:[#allocation8 + $0x40] sm:$0xf] }
  0xcc   :  { %v1252_v25 = vor.u32 %v1338_v23, %v1249_v24  ;;  %v1087_v23 = vld [vmem:[#allocation8 + $0x88] sm:$0xf]  ;;  %v1084_v24 = vor.u32 %v1297_v19, %v1081_v22  ;;  %v1223_v19 = vld [vmem:[#allocation8 + $0x190] sm:$0xf] }
  0xcd   :  { %v1381_v37 = vpop.eup %1380  ;;  %v217_v38 = vmul.f32 0.7978846, %v213_v36  ;;  %v202_v39 = vmul.f32 0.044715, %v193_v35  ;;  %v198_v52 = vmul.f32 0.5, %v193_v35  ;;  %780 = vmatpush.bf16.msra.mxu2 %v1212_v33 }
  0xce   :  { %v224_v41 = vadd.f32 1.0, %v1381_v37  ;;  %817 = vmatpush.bf16.msrb.mxu0 %v1252_v25  ;;  %v1217_v36 = vld [vmem:[#allocation8 + $0x1a8] sm:$0xf0]  ;;  %v1302_v25 = vld [vmem:[#allocation8 + $0xa4] sm:$0xf0] }
  0xcf   :  { %1382 = vtanh.f32 %v217_v38  ;;  %v206_v42 = vmul.f32 %v202_v39, %v193_v35  ;;  %v1175_v38 = vld [vmem:[#allocation8 + $0x140] sm:$0xf]  ;;  %v1088_v28 = vor.u32 %v1302_v25, %v1087_v23  ;;  %v1331_v25 = vld [vmem:[#allocation8 + $0x194] sm:$0xf] }
  0xd0   :  { %v228_v43 = vmul.f32 %v224_v41, %v196_v40  ;;  %v1325_v39 = vld [vmem:[#allocation8 + $0x15c] sm:$0xf0]  ;;  %v1321_v40 = vld [vmem:[#allocation8 + $0x144] sm:$0xf] }
  0xd1   :  { %v210_v44 = vmul.f32 %v206_v42, %v193_v35  ;;  %v1176_v41 = vor.u32 %v1325_v39, %v1175_v38  ;;  %v1177_v42 = vld [vmem:[#allocation8 + $0x160] sm:$0xf0] }
  0xd2   :  { %233 = vadd.xlane.f32.xlu0 %v228_v43 }
  0xd3   :  { %v214_v45 = vadd.f32 %v210_v44, %v193_v35  ;;  %v1330_v35 = vld [vmem:[#allocation8 + $0x18c] sm:$0xf]  ;;  %v1326_v44 = vld [vmem:[#allocation8 + $0x164] sm:$0xf0]  ;;  %762 = vmatpush.bf16.msra.mxu1 %v1176_v41 }
  0xd4   :  { %v1220_v37 = vor.u32 %v1330_v35, %v1217_v36  ;;  %v1055_v35 = vld [vmem:[#allocation8 + $0x48] sm:$0xf]  ;;  %v1057_v41 = vld [vmem:[#allocation8 + $0x68] sm:$0xf0] }
  0xd5   :  { %v1383_v46 = vpop.eup %1382  ;;  %v218_v47 = vmul.f32 0.7978846, %v214_v45  ;;  %v1180_v45 = vor.u32 %v1321_v40, %v1177_v42  ;;  %v1294_v36 = vld [vmem:[#allocation8 + $0x64] sm:$0xf0]  ;;  %v1290_v40 = vld [vmem:[#allocation8 + $0x4c] sm:$0xf] }
  0xd6   :  { %v225_v49 = vadd.f32 1.0, %v1383_v46  ;;  %818 = vmatpush.bf16.msrb.mxu0 %v1220_v37  ;;  %v1056_v39 = vor.u32 %v1294_v36, %v1055_v35  ;;  %v1327_v36 = vld [vmem:[#allocation8 + $0x16c] sm:$0xf0] }
  0xd7   :  { %1384 = vtanh.f32 %v218_v47  ;;  %v1322_v47 = vld [vmem:[#allocation8 + $0x14c] sm:$0xf]  ;;  %781 = vmatpush.bf16.msra.mxu2 %v1180_v45  ;;  %v1285_v45 = vld [vmem:[#allocation8 + $0x1c] sm:$0xf0] }
  0xd8   :  { %v229_v50 = vmul.f32 %v225_v49, %v197_v48  ;;  %1386 = vrcp.f32 %v1532_v55  ;;  %v1185_v48 = vld [vmem:[#allocation8 + $0x168] sm:$0xf0]  ;;  %v1151_v55 = vld [vmem:[#allocation8 + $0x108] sm:$0xf] }
  0xd9   :  { %v1188_v49 = vor.u32 %v1322_v47, %v1185_v48 }
  0xda   :  { %235 = vadd.xlane.f32.xlu1 %v229_v50 }
  0xdb   :  { %819 = vmatpush.bf16.msrb.mxu0 %v1188_v49 }
  0xdd   :  { %v1385_v51 = vpop.eup %1384 }
  0xde   :  { %v226_v53 = vadd.f32 1.0, %v1385_v51  ;;  %v1387_v56 = vpop.eup %1386  ;;  %v1317_v51 = vld [vmem:[#allocation8 + $0x11c] sm:$0xf0] }
  0xdf   :  { %v240_v57 = vmul.f32 128.0, %v1387_v56  ;;  %vm244_vm0 = vweird.f32 %v1387_v56 }
  0xe0   :  { %v230_v54 = vmul.f32 %v226_v53, %v198_v52  ;;  %v1313_v52 = vld [vmem:[#allocation8 + $0x104] sm:$0xf] }
  0xe1   :  { %v241_v58 = vsub.f32 1.0, %v240_v57 }
  0xe2   :  { %237 = vadd.xlane.f32.xlu1 %v230_v54 }
  0xe3   :  { %v242_v59 = vmul.f32 %v1387_v56, %v241_v58 }
  0xe5   :  { %v243_v60 = vadd.f32 %v1387_v56, %v242_v59  ;;  %v1314_v59 = vld [vmem:[#allocation8 + $0x10c] sm:$0xf] }
  0xe7   :  { %v1594_v61 = vsel %vm244_vm0, %v1387_v56, %v243_v60  ;;  %v1318_v56 = vld [vmem:[#allocation8 + $0x124] sm:$0xf0]  ;;  %v1153_v60 = vld [vmem:[#allocation8 + $0x128] sm:$0xf0] }
  0xe8   :  { %v1152_v58 = vor.u32 %v1318_v56, %v1151_v55  ;;  %v1282_v55 = vld [vmem:[#allocation8 + $0xc] sm:$0xf] }
  0xe9   :  { %v1025_v56 = vld [vmem:[#allocation8 + $0x28] sm:$0xf0] }
 0x13d   :  { %v232_v62 = vpop.xlane.xlu0 %231 }
 0x13e   :  { %v246_v63 = vmul.f32 %v1594_v61, %v232_v62  ;;  %v1156_v62 = vor.u32 %v1314_v59, %v1153_v60  ;;  %v1255_v60 = vld [vmem:[#allocation8 + $0x1d0] sm:$0xf] }
 0x140   :  { %v1597_v0 = vsub.f32 %v227_v32, %v246_v63  ;;  %v1334_v32 = vld [vmem:[#allocation8 + $0x1a4] sm:$0xf0]  ;;  %v1111_v63 = vld [vmem:[#allocation8 + $0xc0] sm:$0xf]  ;;  %820 = vmatpush.bf16.msrb.mxu0 %v1156_v62  ;;  %v1343_v62 = vld [vmem:[#allocation8 + $0x1ec] sm:$0xf0] }
 0x141   :  { %v1216_v34 = vor.u32 %v1334_v32, %v1215_v31  ;;  %v1293_v31 = vld [vmem:[#allocation8 + $0x5c] sm:$0xf0]  ;;  %v1289_v32 = vld [vmem:[#allocation8 + $0x44] sm:$0xf] }
 0x142   :  { %v254_v1 = vmul.f32 %v1597_v0, %v1597_v0  ;;  %v1048_v33 = vor.u32 %v1293_v31, %v1047_v30  ;;  %v1332_v30 = vld [vmem:[#allocation8 + $0x19c] sm:$0xf]  ;;  %v1095_v31 = vld [vmem:[#allocation8 + $0x90] sm:$0xf] }
 0x143   :  { %799 = vmatpush.bf16.msra.mxu3 %v1216_v34  ;;  %v1049_v34 = vld [vmem:[#allocation8 + $0x60] sm:$0xf0] }
 0x144   :  { %258 = vadd.xlane.f32.xlu2 %v254_v1  ;;  %v1309_v1 = vld [vmem:[#allocation8 + $0xdc] sm:$0xf0]  ;;  %v1052_v38 = vor.u32 %v1289_v32, %v1049_v34  ;;  %v1233_v34 = vld [vmem:[#allocation8 + $0x1b8] sm:$0xf0] }
 0x145   :  { %v234_v2 = vpop.xlane.xlu0 %233  ;;  %v1650_v35 = vor.u32 %v1332_v30, %v1233_v34 }
 0x146   :  { %v247_v3 = vmul.f32 %v1594_v61, %v234_v2  ;;  %v1305_v2 = vld [vmem:[#allocation8 + $0xc4] sm:$0xf] }
 0x148   :  { %v1602_v4 = vsub.f32 %v228_v43, %v247_v3  ;;  %v1183_v43 = vld [vmem:[#allocation8 + $0x148] sm:$0xf]  ;;  %v1112_v3 = vor.u32 %v1309_v1, %v1111_v63  ;;  %v1339_v63 = vld [vmem:[#allocation8 + $0x1d4] sm:$0xf] }
 0x149   :  { %v1184_v46 = vor.u32 %v1326_v44, %v1183_v43  ;;  %v1060_v43 = vor.u32 %v1290_v40, %v1057_v41  ;;  %v1015_v44 = vld [vmem:[#allocation8] sm:$0xf] }
 0x14a   :  { %v255_v5 = vmul.f32 %v1602_v4, %v1602_v4  ;;  %v1016_v49 = vor.u32 %v1285_v45, %v1015_v44  ;;  %v1658_v44 = vld [vmem:[%s1739_s3] ss:$0 sm:$0xff] }
 0x14b   :  { %800 = vmatpush.bf16.msra.mxu3 %v1184_v46  ;;  %v1281_v46 = vld [vmem:[#allocation8 + $0x4] sm:$0xf] }
 0x14c   :  { %260 = vadd.xlane.f32.xlu2 %v255_v5  ;;  %v1113_v5 = vld [vmem:[#allocation8 + $0xe0] sm:$0xf0] }
 0x14d   :  { %v236_v6 = vpop.xlane.xlu1 %235 }
 0x14e   :  { %v248_v7 = vmul.f32 %v1594_v61, %v236_v6  ;;  %v1119_v6 = vld [vmem:[#allocation8 + $0xc8] sm:$0xf] }
 0x14f   :  { %801 = vmatpush.bf16.msra.mxu3 %v1152_v58  ;;  %v1028_v58 = vor.u32 %v1282_v55, %v1025_v56  ;;  %v1319_v55 = vld [vmem:[#allocation8 + $0x12c] sm:$0xf0] }
 0x150   :  { %v1607_v8 = vsub.f32 %v229_v50, %v248_v7  ;;  %v1143_v50 = vld [vmem:[#allocation8 + $0x100] sm:$0xf]  ;;  %v1310_v7 = vld [vmem:[#allocation8 + $0xe4] sm:$0xf0] }
 0x151   :  { %v1144_v53 = vor.u32 %v1317_v51, %v1143_v50  ;;  %v1017_v50 = vld [vmem:[#allocation8 + $0x20] sm:$0xf0]  ;;  %v1023_v51 = vld [vmem:[#allocation8 + $0x8] sm:$0xf] }
 0x152   :  { %v256_v9 = vmul.f32 %v1607_v8, %v1607_v8 }
 0x153   :  { %763 = vmatpush.bf16.msra.mxu1 %v1144_v53  ;;  %v1020_v53 = vor.u32 %v1281_v46, %v1017_v50  ;;  %v1324_v50 = vld [vmem:[#allocation8 + $0x15c] sm:$0xf] }
 0x154   :  { %262 = vadd.xlane.f32.xlu0 %v256_v9 }
 0x155   :  { %v238_v10 = vpop.xlane.xlu1 %237 }
 0x156   :  { %v249_v11 = vmul.f32 %v1594_v61, %v238_v10  ;;  %v1116_v10 = vor.u32 %v1305_v2, %v1113_v5  ;;  %v1257_v5 = vld [vmem:[#allocation8 + $0x1f0] sm:$0xf0] }
 0x157   :  { %764 = vmatpush.bf16.msra.mxu1 %v1112_v3  ;;  %v1256_v3 = vor.u32 %v1343_v62, %v1255_v60  ;;  %v1161_v60 = vld [vmem:[#allocation8 + $0x130] sm:$0xf0] }
 0x158   :  { %v1612_v12 = vsub.f32 %v230_v54, %v249_v11  ;;  %v1145_v54 = vld [vmem:[#allocation8 + $0x120] sm:$0xf0]  ;;  %v1120_v11 = vor.u32 %v1310_v7, %v1119_v6  ;;  %v1263_v6 = vld [vmem:[#allocation8 + $0x1d8] sm:$0xf] }
 0x159   :  { %v1148_v57 = vor.u32 %v1313_v52, %v1145_v54  ;;  %v1286_v54 = vld [vmem:[#allocation8 + $0x24] sm:$0xf0] }
 0x15a   :  { %v257_v13 = vmul.f32 %v1612_v12, %v1612_v12  ;;  %802 = vmatpush.bf16.msra.mxu3 %v1120_v11  ;;  %v1340_v11 = vld [vmem:[#allocation8 + $0x1dc] sm:$0xf] }
 0x15b   :  { %782 = vmatpush.bf16.msra.mxu2 %v1148_v57  ;;  %765 = vmatpush.bf16.msra.mxu1 %v1080_v21  ;;  %v1024_v57 = vor.u32 %v1286_v54, %v1023_v51  ;;  %v1335_v21 = vld [vmem:[#allocation8 + $0x1ac] sm:$0xf0]  ;;  %v1201_v51 = vld [vmem:[#allocation8 + $0x178] sm:$0xf0] }
 0x15c   :  { %264 = vadd.xlane.f32.xlu1 %v257_v13  ;;  %v1306_v13 = vld [vmem:[#allocation8 + $0xcc] sm:$0xf]  ;;  %v1159_v54 = vld [vmem:[#allocation8 + $0x110] sm:$0xf] }
 0x15d   :  { %v1124_v16 = vor.u32 %v1306_v13, %v1121_v14  ;;  %v1265_v13 = vld [vmem:[#allocation8 + $0x1f8] sm:$0xf0] }
 0x15e   :  { %803 = vmatpush.bf16.msra.mxu3 %v1088_v28  ;;  %v1228_v28 = vor.u32 %v1331_v25, %v1225_v26  ;;  %v1312_v26 = vld [vmem:[#allocation8 + $0xf4] sm:$0xf0] }
 0x15f   :  { %783 = vmatpush.bf16.msra.mxu2 %v1116_v10  ;;  %821 = vmatpush.bf16.msrb.mxu0 %v1124_v16  ;;  %v1344_v10 = vld [vmem:[#allocation8 + $0x1f4] sm:$0xf0]  ;;  %v1630_v16 = vor.u32 %v1340_v11, %v1265_v13 }
 0x160   :  { %766 = vmatpush.bf16.msra.mxu1 %v1048_v33 }
 0x162   :  { %804 = vmatpush.bf16.msra.mxu3 %v1056_v39 }
 0x163   :  { %784 = vmatpush.bf16.msra.mxu2 %v1084_v24  ;;  %822 = vmatpush.bf16.msrb.mxu0 %v1092_v29  ;;  %v1224_v24 = vor.u32 %v1335_v21, %v1223_v19  ;;  %v1336_v29 = vld [vmem:[#allocation8 + $0x1b4] sm:$0xf0]  ;;  %v1307_v19 = vld [vmem:[#allocation8 + $0xd4] sm:$0xf] }
 0x164   :  { %767 = vmatpush.bf16.msra.mxu1 %v1016_v49  ;;  %v1232_v33 = vor.u32 %v1336_v29, %v1231_v27  ;;  %v1328_v49 = vld [vmem:[#allocation8 + $0x174] sm:$0xf0]  ;;  %v1308_v27 = vld [vmem:[#allocation8 + $0xdc] sm:$0xf] }
 0x166   :  { %805 = vmatpush.bf16.msra.mxu3 %v1024_v57 }
 0x167   :  { %785 = vmatpush.bf16.msra.mxu2 %v1052_v38  ;;  %823 = vmatpush.bf16.msrb.mxu0 %v1060_v43  ;;  %v1199_v43 = vld [vmem:[#allocation8 + $0x158] sm:$0xf] }
 0x168   :  { %836 = vmatpush.bf16.msrb.mxu1 %v1256_v3  ;;  %v1320_v3 = vld [vmem:[#allocation8 + $0x134] sm:$0xf0] }
 0x16b   :  { %786 = vmatpush.bf16.msra.mxu2 %v1020_v53  ;;  %824 = vmatpush.bf16.msrb.mxu0 %v1028_v58  ;;  %v1663_v53 = vor.u32 %v1324_v50, %v1201_v51  ;;  %v1160_v58 = vor.u32 %v1319_v55, %v1159_v54 }
 0x16c   :  { %837 = vmatpush.bf16.msrb.mxu1 %v1224_v24  ;;  %v1135_v24 = vld [vmem:[#allocation8 + $0xd8] sm:$0xf] }
 0x16f   :  { %893 = vmatpush.bf16.msra.mxu0 %v1630_v16 }
 0x173   :  { %894 = vmatpush.bf16.msra.mxu0 %v1650_v35 }
 0x177   :  { %895 = vmatpush.bf16.msra.mxu0 %v1663_v53 }
 0x1b7   :  { %v259_v9 = vpop.xlane.xlu2 %258 }
 0x1b8   :  { %v266_v15 = vmul.f32 %v259_v9, %v1594_v61  ;;  %v1260_v9 = vor.u32 %v1339_v63, %v1257_v5  ;;  %v1316_v5 = vld [vmem:[#allocation8 + $0x11c] sm:$0xf] }
 0x1ba   :  { %v1617_v20 = vadd.f32 1e-10, %v266_v15  ;;  %v1264_v15 = vor.u32 %v1344_v10, %v1263_v6  ;;  %855 = vmatpush.bf16.msrb.mxu2 %v1260_v9  ;;  %v1169_v6 = vld [vmem:[#allocation8 + $0x138] sm:$0xf0] }
 0x1bb   :  { %v1685_v10 = vor.u32 %v1316_v5, %v1169_v6  ;;  %v1073_v5 = vld [vmem:[#allocation8 + $0x78] sm:$0xf0] }
 0x1bc   :  { %1388 = vrsqrt.f32 %v1617_v20  ;;  %874 = vmatpush.bf16.msrb.mxu3 %v1264_v15  ;;  %vm280_vm2 = vweird.f32 %v1617_v20  ;;  %v1311_v15 = vld [vmem:[#allocation8 + $0xec] sm:$0xf0] }
 0x1bd   :  { %896 = vmatpush.bf16.msra.mxu0 %v1685_v10 }
 0x1be   :  { %856 = vmatpush.bf16.msrb.mxu2 %v1228_v28  ;;  %v1137_v28 = vld [vmem:[#allocation8 + $0xf8] sm:$0xf0] }
 0x1bf   :  { %v261_v37 = vpop.xlane.xlu2 %260  ;;  %v1691_v30 = vor.u32 %v1308_v27, %v1137_v28 }
 0x1c0   :  { %v267_v42 = vmul.f32 %v261_v37, %v1594_v61  ;;  %v1323_v37 = vld [vmem:[#allocation8 + $0x154] sm:$0xf]  ;;  %875 = vmatpush.bf16.msrb.mxu3 %v1232_v33 }
 0x1c1   :  { %897 = vmatpush.bf16.msra.mxu0 %v1691_v30 }
 0x1c2   :  { %v1621_v47 = vpop.eup %1388  ;;  %v1623_v48 = vadd.f32 1e-10, %v267_v42  ;;  %v1193_v42 = vld [vmem:[#allocation8 + $0x170] sm:$0xf0] }
 0x1c3   :  { %v275_v52 = vmul.f32 %v1621_v47, %v1617_v20  ;;  %vm281_vm1 = vweird.f32 %v1621_v47  ;;  %v1191_v20 = vld [vmem:[#allocation8 + $0x150] sm:$0xf]  ;;  %v1196_v46 = vor.u32 %v1323_v37, %v1193_v42  ;;  %v1299_v37 = vld [vmem:[#allocation8 + $0x94] sm:$0xf] }
 0x1c4   :  { %1390 = vrsqrt.f32 %v1623_v48  ;;  %vm1645_vm3 = vmor %vm280_vm2, %vm281_vm1  ;;  %v1192_v41 = vor.u32 %v1327_v36, %v1191_v20  ;;  %vm290_vm5 = vweird.f32 %v1623_v48 }
 0x1c5   :  { %v276_v59 = vmul.f32 %v1621_v47, %v275_v52  ;;  %v1200_v52 = vor.u32 %v1328_v49, %v1199_v43  ;;  %857 = vmatpush.bf16.msrb.mxu2 %v1196_v46  ;;  %v1304_v43 = vld [vmem:[#allocation8 + $0xb4] sm:$0xf0]  ;;  %v1105_v46 = vld [vmem:[#allocation8 + $0xb8] sm:$0xf0] }
 0x1c6   :  { %838 = vmatpush.bf16.msrb.mxu1 %v1192_v41 }
 0x1c7   :  { %v277_v1 = vmul.f32 0.5, %v276_v59  ;;  %v263_v2 = vpop.xlane.xlu0 %262  ;;  %v1315_v59 = vld [vmem:[#allocation8 + $0x114] sm:$0xf]  ;;  %876 = vmatpush.bf16.msrb.mxu3 %v1200_v52  ;;  %v1295_v52 = vld [vmem:[#allocation8 + $0x6c] sm:$0xf0] }
 0x1c8   :  { %v268_v7 = vmul.f32 %v263_v2, %v1594_v61  ;;  %v1167_v2 = vld [vmem:[#allocation8 + $0x118] sm:$0xf] }
 0x1c9   :  { %v278_v14 = vsub.f32 1.5, %v277_v1  ;;  %v1164_v1 = vor.u32 %v1315_v59, %v1161_v60  ;;  %v1071_v59 = vld [vmem:[#allocation8 + $0x58] sm:$0xf] }
 0x1ca   :  { %v1632_v17 = vpop.eup %1390  ;;  %v1635_v18 = vadd.f32 1e-10, %v268_v7  ;;  %839 = vmatpush.bf16.msrb.mxu1 %v1160_v58  ;;  %v1065_v58 = vld [vmem:[#allocation8 + $0x70] sm:$0xf0] }
 0x1cb   :  { %v279_v22 = vmul.f32 %v1621_v47, %v278_v14  ;;  %v285_v23 = vmul.f32 %v1632_v17, %v1623_v48  ;;  %vm291_vm4 = vweird.f32 %v1632_v17  ;;  %v1681_v48 = vld [vmem:[%s1740_s4] ss:$0 sm:$0xff]  ;;  %858 = vmatpush.bf16.msrb.mxu2 %v1164_v1  ;;  %v1127_v14 = vld [vmem:[#allocation8 + $0xd0] sm:$0xf]  ;;  %v1292_v1 = vld [vmem:[#allocation8 + $0x5c] sm:$0xf] }
 0x1cc   :  { %1392 = vrsqrt.f32 %v1635_v18  ;;  %vm292_vm6 = vmor %vm290_vm5, %vm291_vm4  ;;  %vm300_vm8 = vweird.f32 %v1635_v18  ;;  %v1076_v6 = vor.u32 %v1292_v1, %v1073_v5  ;;  %s1533_s4 = smov [#allocation11]  }
 0x1cd   :  { %v286_v32 = vmul.f32 %v1632_v17, %v285_v23  ;;  %v283_v38 = vsel %vm1645_vm3, %v1621_v47, %v279_v22  ;;  %v1128_v22 = vor.u32 %v1311_v15, %v1127_v14  ;;  %v1129_v23 = vld [vmem:[#allocation8 + $0xf0] sm:$0xf0]  ;;  %v1039_v15 = vld [vmem:[#allocation8 + $0x18] sm:$0xf]  ;;  %s948_s25 = sshll.u32 %s1533_s4, 4  ;;  %s949_s25 = int_to_ptr.vmem [resolvable:$true] %s948_s25 }
 0x1ce   :  { %v314_v57 = vmul.f32 %v283_v38, %v1597_v0  ;;  %v1168_v0 = vor.u32 %v1320_v3, %v1167_v2  ;;  %v1132_v25 = vor.u32 %v1307_v19, %v1129_v23  ;;  %v1097_v38 = vld [vmem:[#allocation8 + $0xb0] sm:$0xf0]  ;;  %v1041_v23 = vld [vmem:[#allocation8 + $0x38] sm:$0xf0] }
 0x1cf   :  { %v287_v39 = vmul.f32 0.5, %v286_v32  ;;  %v265_v40 = vpop.xlane.xlu1 %264  ;;  %840 = vmatpush.bf16.msrb.mxu1 %v1128_v22  ;;  %v1303_v32 = vld [vmem:[#allocation8 + $0xac] sm:$0xf0]  ;;  %v1100_v42 = vor.u32 %v1299_v37, %v1097_v38  ;;  %v1284_v22 = vld [vmem:[#allocation8 + $0x1c] sm:$0xf] }
 0x1d0   :  { %v269_v45 = vmul.f32 %v265_v40, %v1594_v61  ;;  %v322_v11 = vmul.f32 %v1658_v44, %v314_v57  ;;  %877 = vmatpush.bf16.msrb.mxu3 %v1168_v0  ;;  %859 = vmatpush.bf16.msrb.mxu2 %v1132_v25  ;;  %v1096_v36 = vor.u32 %v1303_v32, %v1095_v31  ;;  %v1291_v57 = vld [vmem:[#allocation8 + $0x54] sm:$0xf]  ;;  %v1031_v0 = vld [vmem:[#allocation8 + $0x10] sm:$0xf] }
 0x1d1   :  { %v288_v47 = vsub.f32 1.5, %v287_v39  ;;  %v1103_v39 = vld [vmem:[#allocation8 + $0x98] sm:$0xf]  ;;  %v1044_v27 = vor.u32 %v1284_v22, %v1041_v23 }
 0x1d2   :  { %v1665_v56 = vpop.eup %1392  ;;  %v1668_v61 = vadd.f32 1e-10, %v269_v45  ;;  %v330_v34 = vadd.f32 %v1681_v48, %v322_v11  ;;  %v1300_v45 = vld [vmem:[#allocation8 + $0x9c] sm:$0xf]  ;;  %v1104_v50 = vor.u32 %v1304_v43, %v1103_v39  ;;  %v1033_v11 = vld [vmem:[#allocation8 + $0x30] sm:$0xf0] }
 0x1d3   :  { %v289_v62 = vmul.f32 %v1632_v17, %v288_v47  ;;  %v295_v63 = vmul.f32 %v1665_v56, %v1635_v18  ;;  %vm301_vm7 = vweird.f32 %v1665_v56  ;;  %v1702_v51 = vor.u32 %v1300_v45, %v1105_v46  ;;  %v1063_v47 = vld [vmem:[#allocation8 + $0x50] sm:$0xf]  ;;  %841 = vmatpush.bf16.msrb.mxu1 %v1096_v36 }
 0x1d4   :  { %1394 = vrsqrt.f32 %v1668_v61  ;;  %v1064_v55 = vor.u32 %v1295_v52, %v1063_v47  ;;  %vm1708_vm9 = vmor %vm300_vm8, %vm301_vm7  ;;  %860 = vmatpush.bf16.msrb.mxu2 %v1100_v42  ;;  %vm310_vm11 = vweird.f32 %v1668_v61 }
 0x1d5   :  { %v293_v7 = vsel %vm292_vm6, %v1632_v17, %v289_v62  ;;  %v296_v9 = vmul.f32 %v1665_v56, %v295_v63  ;;  %v1068_v62 = vor.u32 %v1291_v57, %v1065_v58  ;;  %v1296_v63 = vld [vmem:[#allocation8 + $0x74] sm:$0xf0]  ;;  %898 = vmatpush.bf16.msra.mxu0 %v1702_v51 }
 0x1d6   :  { %v315_v13 = vmul.f32 %v293_v7, %v1602_v4  ;;  %v1136_v4 = vor.u32 %v1312_v26, %v1135_v24  ;;  %v1072_v3 = vor.u32 %v1296_v63, %v1071_v59  ;;  %v1287_v7 = vld [vmem:[#allocation8 + $0x2c] sm:$0xf0] }
 0x1d7   :  { %v297_v21 = vmul.f32 0.5, %v296_v9  ;;  %v1283_v9 = vld [vmem:[#allocation8 + $0x14] sm:$0xf]  ;;  %842 = vmatpush.bf16.msrb.mxu1 %v1064_v55  ;;  %v1032_v14 = vor.u32 %v1287_v7, %v1031_v0 }
 0x1d8   :  { %v323_v17 = vmul.f32 %v1658_v44, %v315_v13  ;;  %878 = vmatpush.bf16.msrb.mxu3 %v1136_v4  ;;  %861 = vmatpush.bf16.msrb.mxu2 %v1068_v62 }
 0x1d9   :  { %v298_v29 = vsub.f32 1.5, %v297_v21  ;;  %v1288_v21 = vld [vmem:[#allocation8 + $0x34] sm:$0xf0]  ;;  %899 = vmatpush.bf16.msra.mxu0 %v1076_v6 }
 0x1da   :  { %v1693_v33 = vpop.eup %1394  ;;  %v331_v20 = vadd.f32 %v1681_v48, %v323_v17  ;;  %v1040_v26 = vor.u32 %v1288_v21, %v1039_v15 }
 0x1db   :  { %v299_v40 = vmul.f32 %v1665_v56, %v298_v29  ;;  %v305_v41 = vmul.f32 %v1693_v33, %v1668_v61  ;;  %vm311_vm10 = vweird.f32 %v1693_v33  ;;  %843 = vmatpush.bf16.msrb.mxu1 %v1032_v14 }
 0x1dc   :  { %v1348_v49 = vpack.c.bf16 %v331_v20, %v330_v34  ;;  %879 = vmatpush.bf16.msrb.mxu3 %v1104_v50  ;;  %vm312_vm12 = vmor %vm310_vm11, %vm311_vm10 }
 0x1dd   :  { %v306_v54 = vmul.f32 %v1693_v33, %v305_v41  ;;  %v303_v18 = vsel %vm1708_vm9, %v1665_v56, %v299_v40  ;;  %v1036_v56 = vor.u32 %v1283_v9, %v1033_v11  ;;  %900 = vmatpush.bf16.msra.mxu0 %v1044_v27 }
 0x1de   :  { %1349 = vst [vmem:[#allocation2] sm:$0xff] %v1348_v49   ;;  %v316_v19 = vmul.f32 %v303_v18, %v1607_v8 }
 0x1df   :  { %v307_v2 = vmul.f32 0.5, %v306_v54  ;;  %862 = vmatpush.bf16.msrb.mxu2 %v1036_v56 }
 0x1e0   :  { %880 = vmatpush.bf16.msrb.mxu3 %v1072_v3  ;;  %v324_v8 = vmul.f32 %v1658_v44, %v316_v19 }
 0x1e1   :  { %v308_v13 = vsub.f32 1.5, %v307_v2 }
 0x1e2   :  { %v332_v61 = vadd.f32 %v1681_v48, %v324_v8 }
 0x1e3   :  { %v309_v24 = vmul.f32 %v1693_v33, %v308_v13 }
 0x1e4   :  { %881 = vmatpush.bf16.msrb.mxu3 %v1040_v26 }
 0x1e5   :  { %v313_v17 = vsel %vm312_vm12, %v1693_v33, %v309_v24  ;;  %v1279_v25 = vld [vmem:[#allocation2] sm:$0xff] }
 0x1e6   :  { %v317_v28 = vmul.f32 %v313_v17, %v1612_v12  ;;  %768 = vmatmul.bf16.vlgmr.msra.gmra.mxu1 %v1279_v25  ;;  %787 = vmatmul.bf16.vlgmr.msra.gmra.mxu2 %v1279_v25 }
 0x1e7   :  { %806 = vmatmul.bf16.vlgmr.msra.gmra.mxu3 %v1279_v25  ;;  %825 = vmatmul.bf16.vlgmr.msrb.gmra.mxu0 %v1279_v25 }
 0x1e8   :  { %v325_v29 = vmul.f32 %v1658_v44, %v317_v28  ;;  %1356 = vmatpush.bf16.msra.mxu1 %v1630_v16  ;;  %v410_v16 = vld [vmem:[#allocation9] sm:$0xff] }
 0x1e9   :  { %v415_v44 = vperm.slane %v410_v16, 3  ;;  %v414_v33 = vperm.slane %v410_v16, 2  ;;  %v416_v63 = vperm.slane %v410_v16, 4  ;;  %v419_v18 = vperm.slane %v410_v16, 7 }
 0x1ea   :  { %v333_v4 = vadd.f32 %v1681_v48, %v325_v29  ;;  %v417_v11 = vperm.slane %v410_v16, 5  ;;  %v418_v13 = vperm.slane %v410_v16, 6 }
 0x1ec   :  { %v1353_v31 = vpack.c.bf16 %v333_v4, %v332_v61  ;;  %1357 = vmatpush.bf16.msra.mxu1 %v1650_v35  ;;  %v412_v35 = vperm.slane %v410_v16, 0 }
 0x1ee   :  { %1355 = vst [vmem:[#allocation2 + $0x8] sm:$0xff] %v1353_v31  }
 0x1f0   :  { %1358 = vmatpush.bf16.msra.mxu1 %v1663_v53 }
 0x1f4   :  { %1359 = vmatpush.bf16.msra.mxu1 %v1685_v10 }
 0x1f5   :  { %v1280_v12 = vld [vmem:[#allocation2 + $0x8] sm:$0xff] }
 0x1f6   :  { %773 = vmatmul.bf16.gmra.mxu1 %v1280_v12  ;;  %792 = vmatmul.bf16.gmra.mxu2 %v1280_v12 }
 0x1f7   :  { %811 = vmatmul.bf16.gmra.mxu3 %v1280_v12  ;;  %830 = vmatmul.bf16.gmra.mxu0 %v1280_v12 }
 0x1f8   :  { %1360 = vmatpush.bf16.msra.mxu1 %v1691_v30  ;;  %v413_v30 = vperm.slane %v410_v16, 1 }
 0x1fc   :  { %1361 = vmatpush.bf16.msra.mxu1 %v1702_v51 }
 0x200   :  { %1362 = vmatpush.bf16.msra.mxu1 %v1076_v6 }
 0x204   :  { %1363 = vmatpush.bf16.msra.mxu1 %v1044_v27 }
 0x206   :  { %844 = vmatmul.bf16.vlgmr.msrb.gmra.mxu1 %v1279_v25  ;;  %863 = vmatmul.bf16.vlgmr.msrb.gmra.mxu2 %v1279_v25 }
 0x207   :  { %882 = vmatmul.bf16.vlgmr.msrb.gmra.mxu3 %v1279_v25  ;;  %901 = vmatmul.bf16.vlgmr.msra.gmra.mxu0 %v1279_v25 }
 0x216   :  { %849 = vmatmul.bf16.gmra.mxu1 %v1280_v12  ;;  %868 = vmatmul.bf16.gmra.mxu2 %v1280_v12 }
 0x217   :  { %887 = vmatmul.bf16.gmra.mxu3 %v1280_v12 }
 0x226   :  { %906 = vmatmul.bf16.vlgmr.msra.gmra.mxu1 %v1280_v12 }
 0x263   :  { %v769_v53 = vpop.f32.mrf.mxu1 }
 0x264   :  { %v770_v48 = vadd.f32 %v769_v53, %v412_v35  ;;  %v826_v10 = vpop.f32.mrf.mxu0 }
 0x265   :  { %v827_v32 = vadd.f32 %v826_v10, %v415_v44 }
 0x266   :  { %912 = vst [vmem:[#allocation11] sm:$0xff] %v770_v48 }
 0x267   :  { %915 = vst [vmem:[#allocation11 + $0x18] sm:$0xff] %v827_v32 }
 0x269   :  { %v788_v34 = vpop.f32.mrf.mxu2 }
 0x26a   :  { %v789_v20 = vadd.f32 %v788_v34, %v413_v30  ;;  %v807_v36 = vpop.f32.mrf.mxu3 }
 0x26b   :  { %v808_v37 = vadd.f32 %v807_v36, %v414_v33  ;;  %v771_v38 = vpop.f32.mrf.mxu1 }
 0x26c   :  { %913 = vst [vmem:[#allocation11 + $0x8] sm:$0xff] %v789_v20  ;;  %v772_v39 = vadd.f32 %v771_v38, %v412_v35  ;;  %v828_v40 = vpop.f32.mrf.mxu0 }
 0x26d   :  { %914 = vst [vmem:[#allocation11 + $0x10] sm:$0xff] %v808_v37  ;;  %v829_v41 = vadd.f32 %v828_v40, %v415_v44 }
 0x26e   :  { %920 = vst [vmem:[#allocation11 + $0x40] sm:$0xff] %v772_v39 }
 0x26f   :  { %923 = vst [vmem:[#allocation11 + $0x58] sm:$0xff] %v829_v41 }
 0x271   :  { %v790_v42 = vpop.f32.mrf.mxu2 }
 0x272   :  { %v791_v43 = vadd.f32 %v790_v42, %v413_v30  ;;  %v809_v45 = vpop.f32.mrf.mxu3 }
 0x273   :  { %v810_v46 = vadd.f32 %v809_v45, %v414_v33  ;;  %v774_v49 = vpop.f32.mrf.mxu1 }
 0x274   :  { %921 = vst [vmem:[#allocation11 + $0x48] sm:$0xff] %v791_v43  ;;  %v775_v50 = vadd.f32 %v774_v49, %v412_v35  ;;  %v831_v51 = vpop.f32.mrf.mxu0 }
 0x275   :  { %922 = vst [vmem:[#allocation11 + $0x50] sm:$0xff] %v810_v46  ;;  %v832_v47 = vadd.f32 %v831_v51, %v415_v44 }
 0x276   :  { %928 = vst [vmem:[#allocation11 + $0x80] sm:$0xff] %v775_v50 }
 0x277   :  { %931 = vst [vmem:[#allocation11 + $0x98] sm:$0xff] %v832_v47 }
 0x279   :  { %v793_v52 = vpop.f32.mrf.mxu2 }
 0x27a   :  { %v794_v54 = vadd.f32 %v793_v52, %v413_v30  ;;  %v812_v55 = vpop.f32.mrf.mxu3 }
 0x27b   :  { %v813_v57 = vadd.f32 %v812_v55, %v414_v33  ;;  %v776_v58 = vpop.f32.mrf.mxu1 }
 0x27c   :  { %929 = vst [vmem:[#allocation11 + $0x88] sm:$0xff] %v794_v54  ;;  %v777_v59 = vadd.f32 %v776_v58, %v412_v35  ;;  %v833_v60 = vpop.f32.mrf.mxu0 }
 0x27d   :  { %930 = vst [vmem:[#allocation11 + $0x90] sm:$0xff] %v813_v57  ;;  %v834_v62 = vadd.f32 %v833_v60, %v415_v44 }
 0x27e   :  { %936 = vst [vmem:[#allocation11 + $0xc0] sm:$0xff] %v777_v59 }
 0x27f   :  { %939 = vst [vmem:[#allocation11 + $0xd8] sm:$0xff] %v834_v62 }
 0x281   :  { %v795_v1 = vpop.f32.mrf.mxu2 }
 0x282   :  { %v796_v2 = vadd.f32 %v795_v1, %v413_v30  ;;  %v814_v3 = vpop.f32.mrf.mxu3 }
 0x283   :  { %v815_v5 = vadd.f32 %v814_v3, %v414_v33  ;;  %v845_v0 = vpop.f32.mrf.mxu1 }
 0x284   :  { %937 = vst [vmem:[#allocation11 + $0xc8] sm:$0xff] %v796_v2  ;;  %v846_v6 = vadd.f32 %v845_v0, %v416_v63  ;;  %v902_v7 = vpop.f32.mrf.mxu0 }
 0x285   :  { %938 = vst [vmem:[#allocation11 + $0xd0] sm:$0xff] %v815_v5  ;;  %v903_v9 = vadd.f32 %v902_v7, %v419_v18 }
 0x286   :  { %916 = vst [vmem:[#allocation11 + $0x20] sm:$0xff] %v846_v6 }
 0x287   :  { %919 = vst [vmem:[#allocation11 + $0x38] sm:$0xff] %v903_v9 }
 0x289   :  { %v864_v14 = vpop.f32.mrf.mxu2 }
 0x28a   :  { %v865_v15 = vadd.f32 %v864_v14, %v417_v11  ;;  %v883_v19 = vpop.f32.mrf.mxu3 }
 0x28b   :  { %v884_v56 = vadd.f32 %v883_v19, %v418_v13  ;;  %v847_v21 = vpop.f32.mrf.mxu1 }
 0x28c   :  { %917 = vst [vmem:[#allocation11 + $0x28] sm:$0xff] %v865_v15  ;;  %v848_v22 = vadd.f32 %v847_v21, %v416_v63  ;;  %v904_v23 = vpop.f32.mrf.mxu0 }
 0x28d   :  { %918 = vst [vmem:[#allocation11 + $0x30] sm:$0xff] %v884_v56  ;;  %v905_v24 = vadd.f32 %v904_v23, %v419_v18 }
 0x28e   :  { %924 = vst [vmem:[#allocation11 + $0x60] sm:$0xff] %v848_v22 }
 0x28f   :  { %927 = vst [vmem:[#allocation11 + $0x78] sm:$0xff] %v905_v24 }
 0x291   :  { %v866_v17 = vpop.f32.mrf.mxu2 }
 0x292   :  { %v867_v25 = vadd.f32 %v866_v17, %v417_v11  ;;  %v885_v26 = vpop.f32.mrf.mxu3 }
 0x293   :  { %v886_v27 = vadd.f32 %v885_v26, %v418_v13  ;;  %v850_v8 = vpop.f32.mrf.mxu1 }
 0x294   :  { %925 = vst [vmem:[#allocation11 + $0x68] sm:$0xff] %v867_v25  ;;  %v851_v28 = vadd.f32 %v850_v8, %v416_v63 }
 0x295   :  { %926 = vst [vmem:[#allocation11 + $0x70] sm:$0xff] %v886_v27 }
 0x296   :  { %932 = vst [vmem:[#allocation11 + $0xa0] sm:$0xff] %v851_v28 }
 0x299   :  { %v869_v29 = vpop.f32.mrf.mxu2 }
 0x29a   :  { %v870_v61 = vadd.f32 %v869_v29, %v417_v11  ;;  %v888_v4 = vpop.f32.mrf.mxu3 }
 0x29b   :  { %v889_v31 = vadd.f32 %v888_v4, %v418_v13  ;;  %v852_v12 = vpop.f32.mrf.mxu1 }
 0x29c   :  { %933 = vst [vmem:[#allocation11 + $0xa8] sm:$0xff] %v870_v61  ;;  %v853_v16 = vadd.f32 %v852_v12, %v416_v63 }
 0x29d   :  { %934 = vst [vmem:[#allocation11 + $0xb0] sm:$0xff] %v889_v31 }
 0x29e   :  { %940 = vst [vmem:[#allocation11 + $0xe0] sm:$0xff] %v853_v16 }
 0x2a1   :  { %v871_v35 = vpop.f32.mrf.mxu2 }
 0x2a2   :  { %v872_v44 = vadd.f32 %v871_v35, %v417_v11  ;;  %v890_v53 = vpop.f32.mrf.mxu3 }
 0x2a3   :  { %v891_v48 = vadd.f32 %v890_v53, %v418_v13  ;;  %v907_v10 = vpop.f32.mrf.mxu1 }
 0x2a4   :  { %941 = vst [vmem:[#allocation11 + $0xe8] sm:$0xff] %v872_v44  ;;  %v908_v32 = vadd.f32 %v907_v10, %v419_v18 }
 0x2a5   :  { %942 = vst [vmem:[#allocation11 + $0xf0] sm:$0xff] %v891_v48 }
 0x2a6   :  { %935 = vst [vmem:[#allocation11 + $0xb8] sm:$0xff] %v908_v32 }
 0x2ab   :  { %v909_v30 = vpop.f32.mrf.mxu1 }
 0x2ac   :  { %v910_v33 = vadd.f32 %v909_v30, %v419_v18 }
 0x2ae   :  { %943 = vst [vmem:[#allocation11 + $0xf8] sm:$0xff] %v910_v33 }
 0x2af   :  { %956 = dma.vmem_to_hbm [thread:$0]  %s949_s25, 4096, %s951_s28, [#allocation5], %s1534_s29, %s1534_s29, %s1525_s9  }
 0x2b0   :  { %1522 = dma.done.wait [#allocation5], 4096  }
 0x2b1   :  { %1523 = vsyncadd [#allocation5], 4294963200 }
 0x2b2   :  { %961 = vsyncpa [#allocation4], 1 }
 0x2b3   :  { %962 = vsyncpa [#allocation7], 1 }
 0x2b4   :  { %963 = vsyncpa [#allocation10], 1 }
 0x2b5   :  { %964 = vsyncpa [#allocation5], 1 }

</bundles_post_ra>
